<compile_context>
chip_gen: v7x
topology: tpu7x:2x2x1
jax: 0.10.0
libtpu: 0.0.40
codegen_flags: <defaults>
</compile_context>

<pallas_src>
import functools

import jax
import jax.numpy as jnp
from jax.experimental import pallas as pl
from jax.experimental.pallas import tpu as pltpu

_LANE = 128
_SUBLANE = 8
_MAX_FAST_WIDE = 128   # block-diagonal weight cap: 128 feats -> <= 8 MiB f32 resident


def _round_up(x, m):
    return ((x + m - 1) // m) * m


def _vmem_budget_bytes():
    """Chip-aware cap on double-buffered streamed block bytes."""
    try:
        cap = int(pltpu.get_tpu_info().vmem_capacity_bytes)
    except Exception:
        cap = 64 << 20            # assume the smallest (v7x) if the query fails
    return max(8 << 20, min(32 << 20, cap // 4))


def _lane_dense_kernel(n_wide, n_narrow, scal_ref, *refs):
    """Lane-dense path: o[r, c] = sum_i x_i[r*128+c, :] @ w_i + b.

    refs = wide_x (rows,128*d) ..., block-diag weights (128*d,128) ...,
           narrow_x (rows,128) ..., out (rows,128).
    """
    xw = refs[:n_wide]
    wb = refs[n_wide:2 * n_wide]
    xn = refs[2 * n_wide:2 * n_wide + n_narrow]
    o_ref = refs[2 * n_wide + n_narrow]

    acc = jnp.zeros(o_ref.shape, jnp.float32)
    for i in range(n_wide):
        # MXU matmul against the resident block-diagonal weight: the result is
        # already in the lane-dense output layout (no relayout needed).
        acc = acc + jnp.dot(xw[i][...], wb[i][...],
                            preferred_element_type=jnp.float32)
    for j in range(n_narrow):
        # Width-1 args: VPU multiply by their scalar weight from SMEM.
        acc = acc + xn[j][...].astype(jnp.float32) * scal_ref[1 + j]
    o_ref[...] = (acc + scal_ref[0]).astype(o_ref.dtype)


def _row_kernel(n_wide, n_narrow, scal_ref, *refs):
    """Row-layout path: o = sum_i x_i @ w_i + b for one (tile, 1) batch block.

    refs = wide_x (tile,d) ..., wide weight rows (1,d) ...,
           narrow_x (tile,1) ..., out (tile,1).
    """
    xw = refs[:n_wide]
    wr = refs[n_wide:2 * n_wide]
    xn = refs[2 * n_wide:2 * n_wide + n_narrow]
    o_ref = refs[2 * n_wide + n_narrow]

    acc = jnp.zeros(o_ref.shape, jnp.float32)
    for i in range(n_wide):
        # VPU multiply + lane reduce instead of a K=d, N=1 MXU matmul.
        prod = xw[i][...].astype(jnp.float32) * wr[i][...].astype(jnp.float32)
        acc = acc + jnp.sum(prod, axis=-1, keepdims=True)
    for j in range(n_narrow):
        acc = acc + xn[j][...].astype(jnp.float32) * scal_ref[1 + j]
    o_ref[...] = (acc + scal_ref[0]).astype(o_ref.dtype)


def meta_q_value_net(w, b, *args, tile_b=8192, min_pallas_rows=512):
    """Pallas equivalent of MetaQValueNet.forward(*args).

    w: [n_states + 1, 1]  (pre-transposed vs. PyTorch's [1, n_states + 1])
    b: [1] or [1, 1]
    args: arrays sharing leading dims, last dims summing to n_states + 1.
    """
    dims = tuple(int(a.shape[-1]) for a in args)
    feat = sum(dims)
    assert w.shape == (feat, 1), (w.shape, feat)

    lead_shape = args[0].shape[:-1]
    x2ds = [a.reshape((-1, a.shape[-1])) for a in args]   # native dtype, free reshape
    B = x2ds[0].shape[0]
    out_dtype = jnp.result_type(*([a.dtype for a in args] + [w.dtype]))
    out_isz = jnp.dtype(out_dtype).itemsize

    # Per-arg weight offsets (fuses torch.cat: the kernel never sees the concat).
    offs, off = [], 0
    for d in dims:
        offs.append(off)
        off += d
    wide_idx = [i for i, d in enumerate(dims) if d > 1]
    narrow_idx = [i for i, d in enumerate(dims) if d == 1]

    # Bias + the scalar weights of all width-1 args travel together in SMEM.
    bias_f32 = jnp.asarray(b, dtype=jnp.float32).reshape(())
    scalars = jnp.stack(
        [bias_f32] + [w[offs[i], 0].astype(jnp.float32) for i in narrow_idx])

    if B < min_pallas_rows:
        # Pallas launch/step overhead dwarfs the work at tiny batch sizes.
        x = jnp.concatenate(x2ds, axis=-1)
        out = (jnp.dot(x, w, preferred_element_type=jnp.float32)
               + bias_f32).astype(out_dtype)
        return out.reshape(lead_shape + (1,))

    budget = _vmem_budget_bytes()
    sum_wide = sum(dims[i] for i in wide_idx)

    if B % _LANE == 0 and sum_wide <= _MAX_FAST_WIDE:
        # ------------------- lane-dense fast path -------------------
        R = B // _LANE                                   # 128-row lane groups
        stream = out_isz * _LANE                         # bytes per reshaped row
        for i in wide_idx:
            stream += _LANE * dims[i] * jnp.dtype(x2ds[i].dtype).itemsize
        for i in narrow_idx:
            stream += _LANE * jnp.dtype(x2ds[i].dtype).itemsize
        const = sum(_LANE * dims[i] * _LANE * 4 for i in wide_idx)  # resident weights

        rows = max(_SUBLANE, _round_up(max(int(tile_b), _LANE) // _LANE, _SUBLANE))
        avail = max(budget - 2 * const, 2 * stream * _SUBLANE)
        rows = min(rows, max(_SUBLANE,
                             (avail // (2 * stream)) // _SUBLANE * _SUBLANE))
        # >= ~4 grid steps so ("parallel",) splits across both v7x TensorCores.
        rows = min(rows, max(_SUBLANE, _round_up(pl.cdiv(R, 4), _SUBLANE)))
        rows = min(rows, R)
        grid = (pl.cdiv(R, rows),)                        # ragged last block OK

        wide_x, wide_wb = [], []
        if wide_idx:
            eye = jnp.eye(_LANE, dtype=jnp.float32)
        for i in wide_idx:
            d = dims[i]
            wide_x.append(x2ds[i].reshape(R, _LANE * d))            # free reshape
            w_col = w[offs[i]:offs[i] + d, 0].astype(jnp.float32)   # (d,)
            # Block-diagonal [128*d, 128]: column c picks out batch row r*128+c.
            wide_wb.append((eye[:, None, :] * w_col[None, :, None])
                           .reshape(_LANE * d, _LANE))
        narrow_x = [x2ds[i].reshape(R, _LANE) for i in narrow_idx]  # free reshape

        in_specs = [pl.BlockSpec(memory_space=pltpu.MemorySpace.SMEM)]
        in_specs += [pl.BlockSpec((rows, _LANE * dims[i]), lambda g: (g, 0))
                     for i in wide_idx]
        in_specs += [pl.BlockSpec((_LANE * dims[i], _LANE), lambda g: (0, 0))
                     for i in wide_idx]
        in_specs += [pl.BlockSpec((rows, _LANE), lambda g: (g, 0))
                     for _ in narrow_idx]

        vmem_limit = int(2 * const + 2 * stream * rows + (8 << 20))
        out = pl.pallas_call(
            functools.partial(_lane_dense_kernel, len(wide_idx), len(narrow_idx)),
            out_shape=jax.ShapeDtypeStruct((R, _LANE), out_dtype),
            grid=grid,
            in_specs=in_specs,
            out_specs=pl.BlockSpec((rows, _LANE), lambda g: (g, 0)),
            compiler_params=pltpu.CompilerParams(
                dimension_semantics=("parallel",),
                vmem_limit_bytes=vmem_limit),
        )(scalars, *wide_x, *wide_wb, *narrow_x)
        return out.reshape(lead_shape + (1,))

    # ------------- row-layout path (B not 128-aligned; no input copies) -------------
    per_row = out_isz * _LANE
    for i, d in enumerate(dims):
        per_row += _round_up(d, _LANE) * jnp.dtype(x2ds[i].dtype).itemsize
    tile = max(_SUBLANE,
               _round_up(min(int(tile_b), _round_up(B, _SUBLANE)), _SUBLANE))
    tile = min(tile, max(_SUBLANE,
                         (budget // (2 * per_row)) // _SUBLANE * _SUBLANE))
    tile = min(tile, max(_SUBLANE, _round_up(pl.cdiv(B, 4), _SUBLANE)))
    grid = (pl.cdiv(B, tile),)                            # ragged last block OK

    w_rows = [w[offs[i]:offs[i] + dims[i], :].reshape(1, dims[i]) for i in wide_idx]

    in_specs = [pl.BlockSpec(memory_space=pltpu.MemorySpace.SMEM)]
    in_specs += [pl.BlockSpec((tile, dims[i]), lambda g: (g, 0)) for i in wide_idx]
    in_specs += [pl.BlockSpec((1, dims[i]), lambda g: (0, 0)) for i in wide_idx]
    in_specs += [pl.BlockSpec((tile, 1), lambda g: (g, 0)) for _ in narrow_idx]

    vmem_limit = int(2 * per_row * tile + (8 << 20))
    out = pl.pallas_call(
        functools.partial(_row_kernel, len(wide_idx), len(narrow_idx)),
        out_shape=jax.ShapeDtypeStruct((B, 1), out_dtype),
        grid=grid,
        in_specs=in_specs,
        out_specs=pl.BlockSpec((tile, 1), lambda g: (g, 0)),
        compiler_params=pltpu.CompilerParams(
            dimension_semantics=("parallel",),
            vmem_limit_bytes=vmem_limit),
    )(scalars, *[x2ds[i] for i in wide_idx], *w_rows,
      *[x2ds[i] for i in narrow_idx])
    return out.reshape(lead_shape + (1,))


if __name__ == "__main__":
    n_states = 32
    batch = 2048  # 128-aligned -> lane-dense fast path with a 2-step grid

    key = jax.random.PRNGKey(0)
    k_s, k_a, k_w, k_b = jax.random.split(key, 4)

    state = jax.random.normal(k_s, (batch, n_states), dtype=jnp.float32)
    action = jax.random.normal(k_a, (batch, 1), dtype=jnp.float32)

    # Linear(n_states + 1, 1): PyTorch weight is [1, n_states+1]; we store [in, 1].
    in_features = n_states + 1
    bound = 1.0 / float(jnp.sqrt(jnp.float32(in_features)))
    w = jax.random.uniform(k_w, (in_features, 1), minval=-bound, maxval=bound,
                           dtype=jnp.float32)
    b = jax.random.uniform(k_b, (1,), minval=-bound, maxval=bound,
                           dtype=jnp.float32)

    # Lane-dense fast path (B % 128 == 0): state/action/output all lane-dense.
    out = meta_q_value_net(w, b, state, action, tile_b=512)
    out = jax.block_until_ready(out)
    ref = jnp.concatenate([state, action], axis=-1) @ w + b.reshape(1, 1)
    assert out.shape == (batch, 1), out.shape
    assert jnp.allclose(out, ref, atol=1e-4, rtol=1e-4)

    # Non-128-aligned flattened batch (3*37=111) + 3-D leading dims, forced
    # through Pallas: exercises the row-layout path with a ragged cdiv grid
    # (no jnp.pad of the inputs).
    state3 = jax.random.normal(k_s, (3, 37, n_states), dtype=jnp.float32)
    action3 = jax.random.normal(k_a, (3, 37, 1), dtype=jnp.float32)
    out3 = meta_q_value_net(w, b, state3, action3, tile_b=64, min_pallas_rows=0)
    out3 = jax.block_until_ready(out3)
    ref3 = jnp.concatenate([state3, action3], axis=-1) @ w + b.reshape(1, 1)
    assert out3.shape == (3, 37, 1), out3.shape
    assert jnp.allclose(out3, ref3, atol=1e-4, rtol=1e-4)

    # Tiny batch takes the XLA fallback (Pallas overhead not worth ~500 FLOPs).
    out_small = meta_q_value_net(w, b, state[:4], action[:4])
    out_small = jax.block_until_ready(out_small)
    assert out_small.shape == (4, 1)
    assert jnp.allclose(out_small, ref[:4], atol=1e-4, rtol=1e-4)

    print("KERNEL_OK")
</pallas_src>

<mosaic_0001>
module attributes {stable_mosaic.version = 11 : i64} {
  func.func @_lane_dense_kernel(%arg0: i32, %arg1: memref<2xf32, #tpu.memory_space<smem>>, %arg2: memref<8x4096xf32, #tpu.memory_space<vmem>>, %arg3: memref<4096x128xf32, #tpu.memory_space<vmem>>, %arg4: memref<8x128xf32, #tpu.memory_space<vmem>>, %arg5: memref<8x128xf32, #tpu.memory_space<vmem>>) attributes {dimension_semantics = [#tpu.dimension_semantics<parallel>], iteration_bounds = array<i64: 2>, scalar_prefetch = 0 : i64, scratch_operands = 0 : i64, tpu.core_type = #tpu.core_type<tc>, window_params = [{transform_indices = @transform_0, window_bounds = array<i64: 2>}, {transform_indices = @transform_1, window_bounds = array<i64: 8, 4096>}, {pipeline_mode = #tpu.pipeline_mode<synchronous>, transform_indices = @transform_2, window_bounds = array<i64: 4096, 128>}, {transform_indices = @transform_3, window_bounds = array<i64: 8, 128>}, {transform_indices = @transform_4, window_bounds = array<i64: 8, 128>}]} {
    %cst = arith.constant 0.000000e+00 : f32
    %0 = vector.broadcast %cst : f32 to vector<8x128xf32>
    %c0 = arith.constant 0 : index
    %c0_0 = arith.constant 0 : index
    %1 = vector.load %arg2[%c0, %c0_0] : memref<8x4096xf32, #tpu.memory_space<vmem>>, vector<8x4096xf32>
    %c0_1 = arith.constant 0 : index
    %c0_2 = arith.constant 0 : index
    %2 = vector.load %arg3[%c0_1, %c0_2] : memref<4096x128xf32, #tpu.memory_space<vmem>>, vector<4096x128xf32>
    %cst_3 = arith.constant dense<0.000000e+00> : vector<8x128xf32>
    %3 = tpu.matmul %1, %2, %cst_3 {dimension_numbers = #tpu.dot_dimension_numbers<[1], [0], [0], [1], [0, 0, 1, 1], [], []>} : vector<8x4096xf32>, vector<4096x128xf32>, vector<8x128xf32> -> vector<8x128xf32>
    %4 = arith.addf %0, %3 : vector<8x128xf32>
    %c0_4 = arith.constant 0 : index
    %c0_5 = arith.constant 0 : index
    %5 = vector.load %arg4[%c0_4, %c0_5] : memref<8x128xf32, #tpu.memory_space<vmem>>, vector<8x128xf32>
    %c1 = arith.constant 1 : index
    %6 = memref.load %arg1[%c1] : memref<2xf32, #tpu.memory_space<smem>>
    %7 = vector.broadcast %6 : f32 to vector<8x128xf32>
    %8 = arith.mulf %5, %7 : vector<8x128xf32>
    %9 = arith.addf %4, %8 : vector<8x128xf32>
    %c0_6 = arith.constant 0 : index
    %10 = memref.load %arg1[%c0_6] : memref<2xf32, #tpu.memory_space<smem>>
    %11 = vector.broadcast %10 : f32 to vector<8x128xf32>
    %12 = arith.addf %9, %11 : vector<8x128xf32>
    %c0_7 = arith.constant 0 : index
    %c0_8 = arith.constant 0 : index
    %13 = vector.load %arg5[%c0_7, %c0_8] : memref<8x128xf32, #tpu.memory_space<vmem>>, vector<8x128xf32>
    tpu.vector_store %arg5[%c0_7, %c0_8], %12 {strides = array<i32>} : memref<8x128xf32, #tpu.memory_space<vmem>>, vector<8x128xf32>,
    return
  }
  func.func @transform_0(%arg0: i32) -> i32 {
    %c0_i32 = arith.constant 0 : i32
    %c0_i32_0 = arith.constant 0 : i32
    return %c0_i32 : i32
  }
  func.func @transform_1(%arg0: i32) -> (i32, i32) {
    %c0_i32 = arith.constant 0 : i32
    %c0_i32_0 = arith.constant 0 : i32
    return %arg0, %c0_i32 : i32, i32
  }
  func.func @transform_2(%arg0: i32) -> (i32, i32) {
    %c0_i32 = arith.constant 0 : i32
    %c0_i32_0 = arith.constant 0 : i32
    %c0_i32_1 = arith.constant 0 : i32
    return %c0_i32, %c0_i32_0 : i32, i32
  }
  func.func @transform_3(%arg0: i32) -> (i32, i32) {
    %c0_i32 = arith.constant 0 : i32
    %c0_i32_0 = arith.constant 0 : i32
    return %arg0, %c0_i32 : i32, i32
  }
  func.func @transform_4(%arg0: i32) -> (i32, i32) {
    %c0_i32 = arith.constant 0 : i32
    %c0_i32_0 = arith.constant 0 : i32
    return %arg0, %c0_i32 : i32, i32
  }
}

</mosaic_0001>

<bundles_post_ra>
// kernel: tpu_custom_call.1
= control target key start
LH: loop header
LB: loop body
LE: loop exit
PB: predicated region body
PF: predicated region fallthrough
CT: control target
= control target key end

     0   :  { %s3769_s0 = inlined_call_operand.hbm [shape: f32[2], index: 0, kind: input, shape index: {}]   ;;  %s3770_s1 = inlined_call_operand.hbm [shape: f32[16,4096], index: 1, kind: input, shape index: {}]   ;;  %s3771_s2 = inlined_call_operand.hbm [shape: f32[4096,128], index: 2, kind: input, shape index: {}]   ;;  %s3772_s3 = inlined_call_operand.hbm [shape: f32[16,128], index: 3, kind: input, shape index: {}]   ;;  %s3773_s4 = inlined_call_operand.hbm [shape: f32[16,128], index: 4, kind: output, shape index: {}]  }
   0x1   :  { %3778 = sst [smem:[#allocation17_spill]] %s3770_s1 }
   0x2   :  { %9 = vsyncpa [#allocation5], 0 }
   0x3   :  { %10 = vsyncpa [#allocation3], 0 }
   0x4   :  { %12 = vsyncpa [#allocation3 + $0x1], 0 }
   0x5   :  { %13 = vsyncpa [#allocation8], 0 }
   0x6   :  { %14 = vsyncpa [#allocation4], 0 }
   0x7   :  { %16 = vsyncpa [#allocation4 + $0x1], 0  ;;  %s3454_s15 = smov 0   ;;  %s3456_s16 = smov 0  }
   0x8   :  { %s3458_s17 = smov 0   ;;  %s3460_s18 = smov 0  }
   0x9 LB: > { %s3475_s19 = sadd.s32 1, %s3420_s18   ;;  %s50_s20 = sadd.s32 1, %s3416_s17  ;;  %s3420_s18 = sphi %s3460_s18, %s3801_s18   ;;  %s3416_s17 = sphi %s3458_s17, %s3800_s17   ;;  %s3412_s16 = sphi %s3456_s16, %s3799_s16   ;;  %s3408_s15 = sphi %s3454_s15, %s3798_s15  }
   0xa   : > { %s47_s21 = ssub.s32 %s3420_s18, %s3475_s19  ;;  %p57_p0 = scmp.ne.s32.totalorder %s3416_s17, %s3412_s16 }
   0xb   : > { %p48_p1 = scmp.eq.s32.totalorder %s47_s21, 0  ;;  %p58_p2 = scmp.eq.s32.totalorder %s3420_s18, 0 }
   0xc   : > { %p3201_p4 = scmp.lt.s32.totalorder %s3420_s18, 2  ;;  %s182_s23 = sand.u32 1, %s3420_s18  }
   0xd   : > { %s3486_s22 = scalar_select %p48_p1, %s3416_s17, %s50_s20  }
   0xe   : > { %p59_p5 = por %p58_p2, %p57_p0  ;;  %s184_s24 = sand.u32 1, %s3416_s17  }
   0xf   : > { %3779 = sst [smem:[#allocation16_spill]] %s3486_s22  ;;  %s2078_s25 = sshll.u32 %s184_s24, 8 }
  0x10   : > { %s2094_s26 = sshll.u32 %s3420_s18, 12  ;;  %s3780_s1 = sld [smem:[#allocation17_spill]] }
  0x11   : > { %s186_s30 = scalar_lea.vmem [#allocation6], %s2078_s25  ;;  %p3499_p6 = pnand %p3201_p4, %p59_p5 }
  0x12   : > { %s194_s5 = sshll.u32 %s186_s30, 4  ;;  %s3505_s7 = sshll.u32 %s184_s24, 3  ;;  %s3503_s5 = int_to_ptr.vmem [resolvable:$true] %s194_s5 }
  0x13   : > { %s3507_s8 = scalar_lea.sflag [#allocation3], %s182_s23  ;;  %p3775_p8 = pneg %p3499_p6 }
  0x16   : > { %s3497_s29 = scalar_lea.hbm %s3780_s1, %s2094_s26  ;;  %s3246_s12 = scalar_lea.hbm %s3780_s1, 8192 }
  0x17   : > { %s3241_s9 = scalar_lea.hbm %s3497_s29, 4096  ;;  %p3247_p11 = scmp.lt.u32.totalorder %s3497_s29, %s3780_s1 }
  0x18   : > { %p3242_p7 = scmp.ne.s32.totalorder %s3497_s29, %s3241_s9  ;;  %p3248_p12 = scmp.lt.u32.totalorder %s3246_s12, %s3241_s9 }
  0x19   : > { %p3250_p1 = scmp.lt.u32.totalorder %s3241_s9, %s3497_s29 }
  0x1a   : > { %p3244_p9 = pnand %p3775_p8, %p3242_p7  ;;  %p3249_p13 = por %p3248_p12, %p3247_p11 }
  0x1c   : > { %p3245_p10 = pneg %p3244_p9  ;;  %p3251_p2 = por %p3250_p1, %p3249_p13 }
  0x1e   : > { %p3252_p4 = pnand %p3251_p2, %p3245_p10 }
  0x20   : > { %3255 = shalt.err (!%p3252_p4)
}
  0x21   : > { %s3256_s20 = scalar_lea.vmem %s3503_s5, 4096  ;;  %s3422_s21 = smov [#allocation6]  }
  0x22   : > { %p3257_p5 = scmp.ne.s32.totalorder %s3503_s5, %s3256_s20  ;;  %s3261_s23 = sshll.u32 %s3422_s21, 4  ;;  %s3262_s23 = int_to_ptr.vmem [resolvable:$false] %s3261_s23 }
  0x23   : > { %s3263_s24 = scalar_lea.vmem %s3262_s23, 8192  ;;  %p3264_p3 = scmp.lt.s32.totalorder %s3503_s5, %s3262_s23 }
  0x24   : > { %p3259_p7 = pnand %p3257_p5, %p3775_p8  ;;  %p3265_p11 = scmp.lt.s32.totalorder %s3263_s24, %s3256_s20 }
  0x26   : > { %p3260_p9 = pneg %p3259_p7  ;;  %p3266_p12 = por %p3265_p11, %p3264_p3 }
  0x28   : > { %p3267_p13 = pnand %p3266_p12, %p3260_p9 }
  0x2a   : > { %3270 = shalt.err (!%p3267_p13)
}
  0x2b   : > { %3191 = dma.hbm_to_vmem [thread:$0]  (!%p3499_p6), %s3497_s29, 4096, %s3503_s5, %s3507_s8  }
  0x2c   : > { %s3536_s25 = sadd.s32 4294967295, %s3420_s18   ;;  %s2073_s26 = sadd.s32 4294967294, %s3420_s18  }
  0x2d   : > { %p63_p3 = scmp.ne.s32.totalorder %s3412_s16, %s3408_s15  ;;  %p3774_p10 = scmp.eq.s32.totalorder %s3536_s25, 0 }
  0x2e   : > { %p134_p1 = scmp.eq.s32.totalorder %s3536_s25, 1  ;;  %p140_p2 = scmp.eq.s32.totalorder %s2073_s26, 1 }
  0x2f   : > { %p2074_p4 = scmp.ge.s32.totalorder %s3420_s18, 1  ;;  %p3546_p5 = por %p3774_p10, %p63_p3 }
  0x30   : > { %p3553_p7 = por %p134_p1, %p57_p0  ;;  %p3557_p9 = por %p140_p2, %p63_p3 }
  0x31   : > { %s3782_s27 = scalar_select %p3546_p5, 1, 0 }
  0x32   : > { %s3783_s28 = scalar_select %p3553_p7, 1, 0 }
  0x33   : > { %s3784_s29 = scalar_select %p3557_p9, 1, 0 }
  0x34   : > { %p147_p11 = scmp.lt.s32.totalorder %s3420_s18, 3  ;;  %s3423_s5 = smov [#allocation7]  }
  0x35   : > { %s168_s9 = sshll.u32 %s3423_s5, 4  ;;  %s2082_s11 = sshll.u32 %s3420_s18, 7  ;;  %s3568_s9 = int_to_ptr.vmem [resolvable:$true] %s168_s9 }
  0x36   : > { %p3562_p12 = pnand %p2074_p4, %p147_p11  ;;  %s3580_s14 = scalar_lea.hbm %s3772_s3, %s2082_s11 }
  0x37   : > { %s205_s20 = scalar_lea.vmem [#allocation9], %s3505_s7  ;;  %s3271_s26 = scalar_lea.hbm %s3769_s0, 16 }
  0x38   : > { %p3181_p13 = pneg %p3562_p12  ;;  %s212_s21 = sshll.u32 %s205_s20, 4  ;;  %s3583_s21 = int_to_ptr.vmem [resolvable:$true] %s212_s21 }
  0x39   : > { %p3272_p3 = scmp.ne.s32.totalorder %s3769_s0, %s3271_s26  ;;  %p3278_p11 = scmp.lt.u32.totalorder %s3271_s26, %s3769_s0 }
  0x3a   : > { %p3572_p0 = pnand %p3181_p13, %p3774_p10 }
  0x3c   : > { %p3273_p1 = pneg %p3572_p0 }
  0x3e   : > { %p3274_p2 = pnand %p3273_p1, %p3272_p3 }
  0x40   : > { %p3275_p4 = pneg %p3274_p2 }
  0x42   : > { %p3280_p13 = pnand %p3278_p11, %p3275_p4 }
  0x44   : > { %3283 = shalt.err (!%p3280_p13)
}
  0x45   : > { %s3424_s7 = smov [#allocation2]   ;;  %s3284_s24 = scalar_lea.hbm %s3771_s2, 65536 }
  0x46   : > { %3184 = dma.hbm_to_smem (!%p3572_p0), %s3769_s0, 16, %s3424_s7, [#allocation5]  }
  0x47   : > { %p3285_p3 = scmp.ne.s32.totalorder %s3771_s2, %s3284_s24  ;;  %p3291_p11 = scmp.lt.u32.totalorder %s3284_s24, %s3771_s2 }
  0x49   : > { %p3287_p2 = pnand %p3285_p3, %p3273_p1 }
  0x4b   : > { %p3288_p4 = pneg %p3287_p2 }
  0x4d   : > { %p3293_p13 = pnand %p3291_p11, %p3288_p4 }
  0x4f   : > { %3296 = shalt.err (!%p3293_p13)
}
  0x50   : > { %s3297_s12 = scalar_lea.vmem %s3568_s9, 65536  ;;  %p3305_p7 = scmp.lt.s32.totalorder %s3568_s9, %s3568_s9 }
  0x51   : > { %p3298_p10 = scmp.ne.s32.totalorder %s3568_s9, %s3297_s12  ;;  %p3306_p3 = scmp.lt.s32.totalorder %s3297_s12, %s3297_s12 }
  0x53   : > { %p3300_p8 = pnand %p3298_p10, %p3273_p1  ;;  %p3307_p2 = por %p3306_p3, %p3305_p7 }
  0x55   : > { %p3301_p9 = pneg %p3300_p8 }
  0x57   : > { %p3308_p5 = pnand %p3307_p2, %p3301_p9 }
  0x59   : > { %3311 = shalt.err (!%p3308_p5)
}
  0x5a   : > { %s3425_s22 = smov 128   ;;  %s3426_s7 = smov 8  }
  0x5b   : > { %3187 = dma.hbm_to_vmem [thread:$0]  (!%p3572_p0), %s3771_s2, 65536, %s3568_s9, [#allocation8], %s3425_s22, %s3425_s22, %s3426_s7  }
  0x5c   : > { %s3312_s1 = scalar_lea.hbm %s3580_s14, 128  ;;  %p3787_p10 = pneg %p3499_p6 }
  0x5d   : > { %p3313_p8 = scmp.ne.s32.totalorder %s3580_s14, %s3312_s1  ;;  %s3317_s5 = scalar_lea.hbm %s3772_s3, 256 }
  0x5e   : > { %p3318_p9 = scmp.lt.u32.totalorder %s3580_s14, %s3772_s3  ;;  %p3319_p1 = scmp.lt.u32.totalorder %s3317_s5, %s3312_s1 }
  0x5f   : > { %p3315_p7 = pnand %p3313_p8, %p3787_p10  ;;  %p3321_p11 = scmp.lt.u32.totalorder %s3312_s1, %s3580_s14 }
  0x60   : > { %p3320_p4 = por %p3319_p1, %p3318_p9 }
  0x61   : > { %p3316_p5 = pneg %p3315_p7 }
  0x62   : > { %p3322_p13 = por %p3321_p11, %p3320_p4 }
  0x64   : > { %p3323_p3 = pnand %p3322_p13, %p3316_p5 }
  0x66   : > { %3326 = shalt.err (!%p3323_p3)
}
  0x67   : > { %s3327_s9 = scalar_lea.vmem %s3583_s21, 128  ;;  %p3788_p2 = pmov %p3787_p10 }
  0x68   : > { %p3328_p0 = scmp.ne.s32.totalorder %s3583_s21, %s3327_s9  ;;  %s3427_s10 = smov [#allocation9]  }
  0x69   : > { %s3332_s12 = sshll.u32 %s3427_s10, 4  ;;  %s3333_s12 = int_to_ptr.vmem [resolvable:$false] %s3332_s12 }
  0x6a   : > { %p3330_p8 = pnand %p3328_p0, %p3788_p2  ;;  %s3334_s22 = scalar_lea.vmem %s3333_s12, 256 }
  0x6b   : > { %p3335_p7 = scmp.lt.s32.totalorder %s3583_s21, %s3333_s12  ;;  %p3336_p9 = scmp.lt.s32.totalorder %s3334_s22, %s3327_s9 }
  0x6c   : > { %p3331_p10 = pneg %p3330_p8 }
  0x6d   : > { %p3337_p1 = por %p3336_p9, %p3335_p7 }
  0x6f   : > { %p3338_p4 = pnand %p3337_p1, %p3331_p10 }
  0x71   : > { %3341 = shalt.err (!%p3338_p4)
}
  0x72   : > { %3194 = dma.hbm_to_vmem [thread:$0]  (!%p3499_p6), %s3580_s14, 128, %s3583_s21, %s3507_s8  }
  0x73   : > { %221 = sbr.rel (%p3562_p12) target bundleno = 630 (0x276), region = 36  ;;  %p3789_p5 = scmp.eq.s32.totalorder (!%p3562_p12), %s3536_s25, 0 }
  0x7a   : > { %3387 = dma.done.wait (%p3789_p5), [#allocation5], 16   ;;  %p3790_p11 = pmov %p3789_p5 }
  0x7b   : > { %s227_s7 = sand.u32 1, %s3536_s25   ;;  %s3661_s13 = sand.u32 1, %s3412_s16  }
  0x7c   : > { %3389 = vsyncadd (%p3790_p11), [#allocation5], 4294967280  ;;  %s2085_s6 = sshll.u32 %s3661_s13, 8  ;;  %s228_s20 = scalar_lea.sflag [#allocation3], %s227_s7 }
  0x7d   : > { %s3664_s1 = scalar_lea.vmem [#allocation6], %s2085_s6  ;;  %p3791_p6 = scmp.ne.s32.totalorder %s3782_s27, 0 }
  0x7f   : > { %3391 = dma.done.wait (%p3791_p6), %s228_s20, 4096  }
  0x80   : > { %3393 = vsyncadd (%p3791_p6), %s228_s20, 4294963200  ;;  %p3792_p12 = pmov %p3789_p5 }
  0x81   : > { %p3793_p13 = pmov %p3789_p5 }
  0x82   : > { %3395 = dma.done.wait (%p3792_p12), [#allocation8], 65536  }
  0x83   : > { %3397 = vsyncadd (%p3793_p13), [#allocation8], 4294901760  ;;  %s2087_s8 = sshll.u32 %s3661_s13, 3 }
  0x84   : > { %s3677_s30 = scalar_lea.vmem [#allocation9], %s2087_s8 }
  0x85   : > { %3399 = dma.done.wait (%p3791_p6), %s228_s20, 128  }
  0x86   : > { %3401 = vsyncadd (%p3791_p6), %s228_s20, 4294967168 }
  0x87   : > { %249 = sfence }
  0x88   : > { %v323_v0 = vld [vmem:[#allocation7 + $0x80] sm:$0xff]  ;;  %v324_v1 = vld [vmem:[#allocation7 + $0x88] sm:$0xff]  ;;  %v325_v11 = vld [vmem:[#allocation7 + $0x90] sm:$0xff]  ;;  %s3713_s27 = sld [smem:[#allocation2 + $0x1]]  ;;  %s1943_s14 = sld [smem:[#allocation2]] }
  0x89   : > { %v307_v2 = vld [vmem:[#allocation7] sm:$0xff]  ;;  %v2655_v3 = vpack.c.bf16 %v324_v1, %v323_v0  ;;  %v308_v4 = vld [vmem:[#allocation7 + $0x8] sm:$0xff]  ;;  %v326_v13 = vld [vmem:[#allocation7 + $0x98] sm:$0xff]  ;;  %s2091_s21 = sshll.u32 %s3536_s25, 7  ;;  %s274_s23 = scalar_lea.vmem [#allocation10], %s2087_s8 }
  0x8a   : > { %v355_v5 = vld [vmem:[#allocation7 + $0x180] sm:$0xff]  ;;  %v356_v6 = vld [vmem:[#allocation7 + $0x188] sm:$0xff]  ;;  %v2657_v7 = vpack.c.bf16 %v308_v4, %v307_v2  ;;  %v309_v14 = vld [vmem:[#allocation7 + $0x10] sm:$0xff]  ;;  %v2659_v16 = vpack.c.bf16 %v326_v13, %v325_v11  ;;  %s1961_s24 = sshll.u32 %s274_s23, 4  ;;  %s3725_s11 = scalar_lea.hbm %s3773_s4, %s2091_s21  ;;  %s3727_s24 = int_to_ptr.vmem [resolvable:$true] %s1961_s24 }
  0x8b   : > { %v2687_v8 = vpack.c.bf16 %v356_v6, %v355_v5  ;;  %v339_v9 = vld [vmem:[#allocation7 + $0x100] sm:$0xff]  ;;  %v340_v10 = vld [vmem:[#allocation7 + $0x108] sm:$0xff]  ;;  %2656 = vmatprep.subr.bf16.mxu0 %v2655_v3  ;;  %v310_v15 = vld [vmem:[#allocation7 + $0x18] sm:$0xff]  ;;  %s1948_s9 = scalar_lea.sflag [#allocation4], %s3661_s13  ;;  %s3342_s10 = scalar_lea.vmem %s3727_s24, 128 }
  0x8c   : > { %v2689_v12 = vpack.c.bf16 %v340_v10, %v339_v9  ;;  %2658 = vmatpush3.bf16.msra.mxu0 %v2657_v7  ;;  %v2661_v17 = vpack.c.bf16 %v310_v15, %v309_v14  ;;  %v357_v18 = vld [vmem:[#allocation7 + $0x190] sm:$0xff]  ;;  %v358_v19 = vld [vmem:[#allocation7 + $0x198] sm:$0xff]  ;;  %v327_v23 = vld [vmem:[#allocation7 + $0xa0] sm:$0xff]  ;;  %p3343_p3 = scmp.ne.s32.totalorder %s3727_s24, %s3342_s10  ;;  %p3794_p0 = scmp.ne.s32.totalorder %s3783_s28, 0 }
  0x8d   : > { %2688 = vmatprep.subr.bf16.mxu1 %v2687_v8  ;;  %v341_v20 = vld [vmem:[#allocation7 + $0x110] sm:$0xff]  ;;  %v2691_v21 = vpack.c.bf16 %v358_v19, %v357_v18  ;;  %v342_v22 = vld [vmem:[#allocation7 + $0x118] sm:$0xff]  ;;  %v328_v24 = vld [vmem:[#allocation7 + $0xa8] sm:$0xff]  ;;  %2660 = vmatprep.subr.bf16.mxu0 %v2659_v16  ;;  %s3428_s25 = smov [#allocation10]  }
  0x8e   : > { %2690 = vmatpush3.bf16.msra.mxu1 %v2689_v12  ;;  %v2693_v25 = vpack.c.bf16 %v342_v22, %v341_v20  ;;  %v2663_v26 = vpack.c.bf16 %v328_v24, %v327_v23  ;;  %v311_v27 = vld [vmem:[#allocation7 + $0x20] sm:$0xff]  ;;  %v312_v28 = vld [vmem:[#allocation7 + $0x28] sm:$0xff]  ;;  %v329_v35 = vld [vmem:[#allocation7 + $0xb0] sm:$0xff]  ;;  %p3344_p2 = pnand %p3343_p3, %p3794_p0  ;;  %s3346_s12 = sshll.u32 %s3428_s25, 4  ;;  %s3347_s12 = int_to_ptr.vmem [resolvable:$false] %s3346_s12 }
  0x8f   : > { %v359_v29 = vld [vmem:[#allocation7 + $0x1a0] sm:$0xff]  ;;  %2692 = vmatprep.subr.bf16.mxu1 %v2691_v21  ;;  %v360_v30 = vld [vmem:[#allocation7 + $0x1a8] sm:$0xff]  ;;  %v2665_v33 = vpack.c.bf16 %v312_v28, %v311_v27  ;;  %v330_v36 = vld [vmem:[#allocation7 + $0xb8] sm:$0xff]  ;;  %s3348_s22 = scalar_lea.vmem %s3347_s12, 256  ;;  %p3349_p10 = scmp.lt.s32.totalorder %s3727_s24, %s3347_s12 }
  0x90   : > { %v343_v31 = vld [vmem:[#allocation7 + $0x120] sm:$0xff]  ;;  %v344_v32 = vld [vmem:[#allocation7 + $0x128] sm:$0xff]  ;;  %2662 = vmatpush3.bf16.msra.mxu0 %v2661_v17  ;;  %v2695_v34 = vpack.c.bf16 %v360_v30, %v359_v29  ;;  %v313_v37 = vld [vmem:[#allocation7 + $0x30] sm:$0xff]  ;;  %v2667_v39 = vpack.c.bf16 %v330_v36, %v329_v35  ;;  %p3345_p8 = pneg %p3344_p2  ;;  %p3350_p7 = scmp.lt.s32.totalorder %s3348_s22, %s3342_s10 }
  0x91   : > { %2664 = vmatprep.subr.bf16.mxu0 %v2663_v26  ;;  %v2697_v38 = vpack.c.bf16 %v344_v32, %v343_v31  ;;  %v314_v40 = vld [vmem:[#allocation7 + $0x38] sm:$0xff]  ;;  %v361_v41 = vld [vmem:[#allocation7 + $0x1b0] sm:$0xff]  ;;  %v331_v46 = vld [vmem:[#allocation7 + $0xc0] sm:$0xff] }
  0x92   : > { %2694 = vmatpush3.bf16.msra.mxu1 %v2693_v25  ;;  %v362_v42 = vld [vmem:[#allocation7 + $0x1b8] sm:$0xff]  ;;  %v345_v44 = vld [vmem:[#allocation7 + $0x130] sm:$0xff]  ;;  %v332_v47 = vld [vmem:[#allocation7 + $0xc8] sm:$0xff]  ;;  %v2669_v48 = vpack.c.bf16 %v314_v40, %v313_v37  ;;  %p3351_p9 = por %p3350_p7, %p3349_p10 }
  0x93   : > { %2696 = vmatprep.subr.bf16.mxu1 %v2695_v34  ;;  %v2699_v43 = vpack.c.bf16 %v362_v42, %v361_v41  ;;  %v346_v45 = vld [vmem:[#allocation7 + $0x138] sm:$0xff]  ;;  %v363_v49 = vld [vmem:[#allocation7 + $0x1c0] sm:$0xff]  ;;  %v364_v50 = vld [vmem:[#allocation7 + $0x1c8] sm:$0xff]  ;;  %v2671_v52 = vpack.c.bf16 %v332_v47, %v331_v46 }
  0x94   : > { %2666 = vmatpush3.bf16.msra.mxu0 %v2665_v33  ;;  %v2701_v51 = vpack.c.bf16 %v346_v45, %v345_v44  ;;  %v315_v53 = vld [vmem:[#allocation7 + $0x40] sm:$0xff]  ;;  %v316_v54 = vld [vmem:[#allocation7 + $0x48] sm:$0xff]  ;;  %v2703_v56 = vpack.c.bf16 %v364_v50, %v363_v49  ;;  %v333_v58 = vld [vmem:[#allocation7 + $0xd0] sm:$0xff]  ;;  %p3352_p1 = pnand %p3351_p9, %p3345_p8 }
  0x95   : > { %2668 = vmatprep.subr.bf16.mxu0 %v2667_v39  ;;  %v347_v55 = vld [vmem:[#allocation7 + $0x140] sm:$0xff]  ;;  %v348_v57 = vld [vmem:[#allocation7 + $0x148] sm:$0xff]  ;;  %v334_v59 = vld [vmem:[#allocation7 + $0xd8] sm:$0xff]  ;;  %v2673_v62 = vpack.c.bf16 %v316_v54, %v315_v53 }
  0x96   : > { %2698 = vmatpush3.bf16.msra.mxu1 %v2697_v38  ;;  %v365_v60 = vld [vmem:[#allocation7 + $0x1d0] sm:$0xff]  ;;  %v366_v61 = vld [vmem:[#allocation7 + $0x1d8] sm:$0xff]  ;;  %v2705_v63 = vpack.c.bf16 %v348_v57, %v347_v55  ;;  %v2675_v0 = vpack.c.bf16 %v334_v59, %v333_v58  ;;  %v335_v6 = vld [vmem:[#allocation7 + $0xe0] sm:$0xff] }
  0x97   : > { %2700 = vmatprep.subr.bf16.mxu1 %v2699_v43  ;;  %v317_v1 = vld [vmem:[#allocation7 + $0x50] sm:$0xff]  ;;  %v318_v2 = vld [vmem:[#allocation7 + $0x58] sm:$0xff]  ;;  %v2707_v4 = vpack.c.bf16 %v366_v61, %v365_v60  ;;  %v336_v7 = vld [vmem:[#allocation7 + $0xe8] sm:$0xff] }
  0x98   : > { %2670 = vmatpush3.bf16.msra.mxu0 %v2669_v48  ;;  %v349_v3 = vld [vmem:[#allocation7 + $0x150] sm:$0xff]  ;;  %v350_v5 = vld [vmem:[#allocation7 + $0x158] sm:$0xff]  ;;  %v367_v8 = vld [vmem:[#allocation7 + $0x1e0] sm:$0xff]  ;;  %v2677_v10 = vpack.c.bf16 %v318_v2, %v317_v1  ;;  %v2679_v14 = vpack.c.bf16 %v336_v7, %v335_v6 }
  0x99   : > { %2672 = vmatprep.subr.bf16.mxu0 %v2671_v52  ;;  %v368_v9 = vld [vmem:[#allocation7 + $0x1e8] sm:$0xff]  ;;  %v319_v11 = vld [vmem:[#allocation7 + $0x60] sm:$0xff]  ;;  %v2709_v13 = vpack.c.bf16 %v350_v5, %v349_v3  ;;  %v337_v19 = vld [vmem:[#allocation7 + $0xf0] sm:$0xff] }
  0x9a   : > { %2702 = vmatpush3.bf16.msra.mxu1 %v2701_v51  ;;  %v320_v12 = vld [vmem:[#allocation7 + $0x68] sm:$0xff]  ;;  %v351_v15 = vld [vmem:[#allocation7 + $0x160] sm:$0xff]  ;;  %v2711_v18 = vpack.c.bf16 %v368_v9, %v367_v8  ;;  %v338_v20 = vld [vmem:[#allocation7 + $0xf8] sm:$0xff] }
  0x9b   : > { %2704 = vmatprep.subr.bf16.mxu1 %v2703_v56  ;;  %v352_v16 = vld [vmem:[#allocation7 + $0x168] sm:$0xff]  ;;  %v278_v21 = vld [vmem:[%s3664_s1 + $0x18] sm:$0xff]  ;;  %v369_v22 = vld [vmem:[#allocation7 + $0x1f0] sm:$0xff]  ;;  %v2681_v24 = vpack.c.bf16 %v320_v12, %v319_v11  ;;  %v2683_v26 = vpack.c.bf16 %v338_v20, %v337_v19 }
  0x9c   : > { %2674 = vmatpush3.bf16.msra.mxu0 %v2673_v62  ;;  %v276_v17 = vld [vmem:[%s3664_s1 + $0x8] sm:$0xff]  ;;  %v370_v23 = vld [vmem:[#allocation7 + $0x1f8] sm:$0xff]  ;;  %957 = vmatprep.mubr.f32.mxu1 %v278_v21  ;;  %v2713_v25 = vpack.c.bf16 %v352_v16, %v351_v15  ;;  %v321_v27 = vld [vmem:[#allocation7 + $0x70] sm:$0xff] }
  0x9d   : > { %2676 = vmatprep.subr.bf16.mxu0 %v2675_v0  ;;  %887 = vmatprep.mubr.f32.mxu0 %v276_v17  ;;  %v322_v28 = vld [vmem:[#allocation7 + $0x78] sm:$0xff]  ;;  %v353_v29 = vld [vmem:[#allocation7 + $0x170] sm:$0xff]  ;;  %v2715_v30 = vpack.c.bf16 %v370_v23, %v369_v22  ;;  %v387_v32 = vld [vmem:[#allocation7 + $0x280] sm:$0xff] }
  0x9e   : > { %2706 = vmatpush3.bf16.msra.mxu1 %v2705_v63  ;;  %v354_v31 = vld [vmem:[#allocation7 + $0x178] sm:$0xff]  ;;  %v388_v33 = vld [vmem:[#allocation7 + $0x288] sm:$0xff]  ;;  %v419_v34 = vld [vmem:[#allocation7 + $0x380] sm:$0xff]  ;;  %v2685_v36 = vpack.c.bf16 %v322_v28, %v321_v27 }
  0x9f   : > { %2708 = vmatprep.subr.bf16.mxu1 %v2707_v4  ;;  %v420_v35 = vld [vmem:[#allocation7 + $0x388] sm:$0xff]  ;;  %v2717_v37 = vpack.c.bf16 %v354_v31, %v353_v29  ;;  %v2719_v38 = vpack.c.bf16 %v388_v33, %v387_v32  ;;  %v371_v39 = vld [vmem:[#allocation7 + $0x200] sm:$0xff]  ;;  %v389_v44 = vld [vmem:[#allocation7 + $0x290] sm:$0xff] }
  0xa0   : > { %2678 = vmatpush3.bf16.msra.mxu0 %v2677_v10  ;;  %v372_v40 = vld [vmem:[#allocation7 + $0x208] sm:$0xff]  ;;  %v403_v41 = vld [vmem:[#allocation7 + $0x300] sm:$0xff]  ;;  %v2751_v42 = vpack.c.bf16 %v420_v35, %v419_v34  ;;  %v390_v45 = vld [vmem:[#allocation7 + $0x298] sm:$0xff] }
  0xa1   : > { %2680 = vmatprep.subr.bf16.mxu0 %v2679_v14  ;;  %v404_v43 = vld [vmem:[#allocation7 + $0x308] sm:$0xff]  ;;  %v421_v46 = vld [vmem:[#allocation7 + $0x390] sm:$0xff]  ;;  %v422_v47 = vld [vmem:[#allocation7 + $0x398] sm:$0xff]  ;;  %v2721_v49 = vpack.c.bf16 %v372_v40, %v371_v39  ;;  %v2723_v52 = vpack.c.bf16 %v390_v45, %v389_v44 }
  0xa2   : > { %2710 = vmatpush3.bf16.msra.mxu1 %v2709_v13  ;;  %v275_v48 = vld [vmem:[%s3664_s1] sm:$0xff]  ;;  %v277_v50 = vld [vmem:[%s3664_s1 + $0x10] sm:$0xff]  ;;  %v2753_v51 = vpack.c.bf16 %v404_v43, %v403_v41  ;;  %v374_v54 = vld [vmem:[#allocation7 + $0x218] sm:$0xff]  ;;  %v2755_v56 = vpack.c.bf16 %v422_v47, %v421_v46 }
  0xa3   : > { %2712 = vmatprep.subr.bf16.mxu1 %v2711_v18  ;;  %v373_v53 = vld [vmem:[#allocation7 + $0x210] sm:$0xff]  ;;  %v406_v57 = vld [vmem:[#allocation7 + $0x318] sm:$0xff]  ;;  %v391_v58 = vld [vmem:[#allocation7 + $0x2a0] sm:$0xff] }
  0xa4   : > { %2682 = vmatpush3.bf16.msra.mxu0 %v2681_v24  ;;  %v405_v55 = vld [vmem:[#allocation7 + $0x310] sm:$0xff]  ;;  %v392_v59 = vld [vmem:[#allocation7 + $0x2a8] sm:$0xff]  ;;  %v423_v60 = vld [vmem:[#allocation7 + $0x3a0] sm:$0xff]  ;;  %v2725_v62 = vpack.c.bf16 %v374_v54, %v373_v53 }
  0xa5   : > { %2684 = vmatprep.subr.bf16.mxu0 %v2683_v26  ;;  %v424_v61 = vld [vmem:[#allocation7 + $0x3a8] sm:$0xff]  ;;  %v2757_v63 = vpack.c.bf16 %v406_v57, %v405_v55  ;;  %v2727_v0 = vpack.c.bf16 %v392_v59, %v391_v58  ;;  %v375_v1 = vld [vmem:[#allocation7 + $0x220] sm:$0xff]  ;;  %v393_v6 = vld [vmem:[#allocation7 + $0x2b0] sm:$0xff] }
  0xa6   : > { %2714 = vmatpush3.bf16.msra.mxu1 %v2713_v25  ;;  %v376_v2 = vld [vmem:[#allocation7 + $0x228] sm:$0xff]  ;;  %v407_v3 = vld [vmem:[#allocation7 + $0x320] sm:$0xff]  ;;  %v2759_v4 = vpack.c.bf16 %v424_v61, %v423_v60  ;;  %v394_v7 = vld [vmem:[#allocation7 + $0x2b8] sm:$0xff] }
  0xa7   : > { %2716 = vmatprep.subr.bf16.mxu1 %v2715_v30  ;;  %v408_v5 = vld [vmem:[#allocation7 + $0x328] sm:$0xff]  ;;  %v425_v8 = vld [vmem:[#allocation7 + $0x3b0] sm:$0xff]  ;;  %v426_v9 = vld [vmem:[#allocation7 + $0x3b8] sm:$0xff]  ;;  %v2729_v10 = vpack.c.bf16 %v376_v2, %v375_v1  ;;  %v2731_v12 = vpack.c.bf16 %v394_v7, %v393_v6 }
  0xa8   : > { %2686 = vmatpush3.bf16.msra.mxu0 %v2685_v36  ;;  %v2761_v11 = vpack.c.bf16 %v408_v5, %v407_v3  ;;  %v377_v13 = vld [vmem:[#allocation7 + $0x230] sm:$0xff]  ;;  %v378_v14 = vld [vmem:[#allocation7 + $0x238] sm:$0xff]  ;;  %v2763_v16 = vpack.c.bf16 %v426_v9, %v425_v8  ;;  %v395_v18 = vld [vmem:[#allocation7 + $0x2c0] sm:$0xff] }
  0xa9   : > { %2720 = vmatprep.subr.bf16.mxu0 %v2719_v38  ;;  %v409_v15 = vld [vmem:[#allocation7 + $0x330] sm:$0xff]  ;;  %v410_v17 = vld [vmem:[#allocation7 + $0x338] sm:$0xff]  ;;  %v396_v19 = vld [vmem:[#allocation7 + $0x2c8] sm:$0xff]  ;;  %v2733_v22 = vpack.c.bf16 %v378_v14, %v377_v13 }
  0xaa   : > { %2718 = vmatpush3.bf16.msra.mxu1 %v2717_v37  ;;  %v427_v20 = vld [vmem:[#allocation7 + $0x3c0] sm:$0xff]  ;;  %v428_v21 = vld [vmem:[#allocation7 + $0x3c8] sm:$0xff]  ;;  %v2765_v25 = vpack.c.bf16 %v410_v17, %v409_v15  ;;  %v2735_v26 = vpack.c.bf16 %v396_v19, %v395_v18  ;;  %v282_v29 = vld [vmem:[%s3664_s1 + $0x38] sm:$0xff] }
  0xab   : > { %2752 = vmatprep.subr.bf16.mxu1 %v2751_v42  ;;  %888 = vmatmul.mubr.f32.vlgmr.msra.gmra.mrb[0].mxu0 %v275_v48  ;;  %v379_v23 = vld [vmem:[#allocation7 + $0x240] sm:$0xff]  ;;  %v280_v24 = vld [vmem:[%s3664_s1 + $0x28] sm:$0xff]  ;;  %v2767_v30 = vpack.c.bf16 %v428_v21, %v427_v20  ;;  %v397_v32 = vld [vmem:[#allocation7 + $0x2d0] sm:$0xff] }
  0xac   : > { %2722 = vmatpush3.bf16.msra.mxu0 %v2721_v49  ;;  %v380_v27 = vld [vmem:[#allocation7 + $0x248] sm:$0xff]  ;;  %v411_v28 = vld [vmem:[#allocation7 + $0x340] sm:$0xff]  ;;  %v398_v33 = vld [vmem:[#allocation7 + $0x2d8] sm:$0xff]  ;;  %1027 = vmatprep.mubr.f32.mxu0 %v280_v24 }
  0xad   : > { %958 = vmatmul.mubr.f32.vlgmr.msra.gmra.mrb[0].mxu1 %v277_v50  ;;  %2724 = vmatprep.subr.bf16.mxu0 %v2723_v52  ;;  %v412_v31 = vld [vmem:[#allocation7 + $0x348] sm:$0xff]  ;;  %v429_v34 = vld [vmem:[#allocation7 + $0x3d0] sm:$0xff]  ;;  %v430_v35 = vld [vmem:[#allocation7 + $0x3d8] sm:$0xff]  ;;  %v2737_v36 = vpack.c.bf16 %v380_v27, %v379_v23  ;;  %v2739_v38 = vpack.c.bf16 %v398_v33, %v397_v32 }
  0xae   : > { %2754 = vmatpush3.bf16.msra.mxu1 %v2753_v51  ;;  %1097 = vmatprep.mubr.f32.mxu1 %v282_v29  ;;  %v2769_v37 = vpack.c.bf16 %v412_v31, %v411_v28  ;;  %v381_v39 = vld [vmem:[#allocation7 + $0x250] sm:$0xff]  ;;  %v382_v40 = vld [vmem:[#allocation7 + $0x258] sm:$0xff]  ;;  %v2771_v42 = vpack.c.bf16 %v430_v35, %v429_v34  ;;  %v399_v44 = vld [vmem:[#allocation7 + $0x2e0] sm:$0xff] }
  0xaf   : > { %2756 = vmatprep.subr.bf16.mxu1 %v2755_v56  ;;  %v413_v41 = vld [vmem:[#allocation7 + $0x350] sm:$0xff]  ;;  %v414_v43 = vld [vmem:[#allocation7 + $0x358] sm:$0xff]  ;;  %v400_v45 = vld [vmem:[#allocation7 + $0x2e8] sm:$0xff]  ;;  %v2741_v48 = vpack.c.bf16 %v382_v40, %v381_v39 }
  0xb0   : > { %2726 = vmatpush3.bf16.msra.mxu0 %v2725_v62  ;;  %v431_v46 = vld [vmem:[#allocation7 + $0x3e0] sm:$0xff]  ;;  %v432_v47 = vld [vmem:[#allocation7 + $0x3e8] sm:$0xff]  ;;  %v2773_v49 = vpack.c.bf16 %v414_v43, %v413_v41  ;;  %v2743_v50 = vpack.c.bf16 %v400_v45, %v399_v44  ;;  %v401_v56 = vld [vmem:[#allocation7 + $0x2f0] sm:$0xff] }
  0xb1   : > { %2728 = vmatprep.subr.bf16.mxu0 %v2727_v0  ;;  %v383_v51 = vld [vmem:[#allocation7 + $0x260] sm:$0xff]  ;;  %v384_v52 = vld [vmem:[#allocation7 + $0x268] sm:$0xff]  ;;  %v2775_v54 = vpack.c.bf16 %v432_v47, %v431_v46  ;;  %v402_v57 = vld [vmem:[#allocation7 + $0x2f8] sm:$0xff] }
  0xb2   : > { %2758 = vmatpush3.bf16.msra.mxu1 %v2757_v63  ;;  %v415_v53 = vld [vmem:[#allocation7 + $0x360] sm:$0xff]  ;;  %v416_v55 = vld [vmem:[#allocation7 + $0x368] sm:$0xff]  ;;  %v433_v58 = vld [vmem:[#allocation7 + $0x3f0] sm:$0xff]  ;;  %v2745_v60 = vpack.c.bf16 %v384_v52, %v383_v51  ;;  %v2747_v62 = vpack.c.bf16 %v402_v57, %v401_v56 }
  0xb3   : > { %2760 = vmatprep.subr.bf16.mxu1 %v2759_v4  ;;  %v434_v59 = vld [vmem:[#allocation7 + $0x3f8] sm:$0xff]  ;;  %v2777_v61 = vpack.c.bf16 %v416_v55, %v415_v53  ;;  %v385_v63 = vld [vmem:[#allocation7 + $0x270] sm:$0xff]  ;;  %v451_v4 = vld [vmem:[#allocation7 + $0x480] sm:$0xff] }
  0xb4   : > { %2730 = vmatpush3.bf16.msra.mxu0 %v2729_v10  ;;  %v386_v0 = vld [vmem:[#allocation7 + $0x278] sm:$0xff]  ;;  %v417_v1 = vld [vmem:[#allocation7 + $0x370] sm:$0xff]  ;;  %v2779_v2 = vpack.c.bf16 %v434_v59, %v433_v58  ;;  %v452_v5 = vld [vmem:[#allocation7 + $0x488] sm:$0xff] }
  0xb5   : > { %2732 = vmatprep.subr.bf16.mxu0 %v2731_v12  ;;  %v418_v3 = vld [vmem:[#allocation7 + $0x378] sm:$0xff]  ;;  %v483_v6 = vld [vmem:[#allocation7 + $0x580] sm:$0xff]  ;;  %v484_v7 = vld [vmem:[#allocation7 + $0x588] sm:$0xff]  ;;  %v2749_v8 = vpack.c.bf16 %v386_v0, %v385_v63  ;;  %v2783_v10 = vpack.c.bf16 %v452_v5, %v451_v4 }
  0xb6   : > { %2762 = vmatpush3.bf16.msra.mxu1 %v2761_v11  ;;  %v2781_v9 = vpack.c.bf16 %v418_v3, %v417_v1  ;;  %v435_v11 = vld [vmem:[#allocation7 + $0x400] sm:$0xff]  ;;  %v436_v12 = vld [vmem:[#allocation7 + $0x408] sm:$0xff]  ;;  %v2815_v14 = vpack.c.bf16 %v484_v7, %v483_v6  ;;  %v454_v17 = vld [vmem:[#allocation7 + $0x498] sm:$0xff] }
  0xb7   : > { %2764 = vmatprep.subr.bf16.mxu1 %v2763_v16  ;;  %v467_v13 = vld [vmem:[#allocation7 + $0x500] sm:$0xff]  ;;  %v468_v15 = vld [vmem:[#allocation7 + $0x508] sm:$0xff]  ;;  %v453_v16 = vld [vmem:[#allocation7 + $0x490] sm:$0xff]  ;;  %v2785_v21 = vpack.c.bf16 %v436_v12, %v435_v11 }
  0xb8   : > { %2734 = vmatpush3.bf16.msra.mxu0 %v2733_v22  ;;  %v485_v18 = vld [vmem:[#allocation7 + $0x590] sm:$0xff]  ;;  %v486_v19 = vld [vmem:[#allocation7 + $0x598] sm:$0xff]  ;;  %v279_v20 = vld [vmem:[%s3664_s1 + $0x20] sm:$0xff]  ;;  %v2817_v23 = vpack.c.bf16 %v468_v15, %v467_v13  ;;  %v2787_v24 = vpack.c.bf16 %v454_v17, %v453_v16 }
  0xb9   : > { %2736 = vmatprep.subr.bf16.mxu0 %v2735_v26  ;;  %v281_v22 = vld [vmem:[%s3664_s1 + $0x30] sm:$0xff]  ;;  %v438_v26 = vld [vmem:[#allocation7 + $0x418] sm:$0xff]  ;;  %v2819_v28 = vpack.c.bf16 %v486_v19, %v485_v18  ;;  %v456_v31 = vld [vmem:[#allocation7 + $0x4a8] sm:$0xff] }
  0xba   : > { %2766 = vmatpush3.bf16.msra.mxu1 %v2765_v25  ;;  %v437_v25 = vld [vmem:[#allocation7 + $0x410] sm:$0xff]  ;;  %v470_v29 = vld [vmem:[#allocation7 + $0x518] sm:$0xff]  ;;  %v487_v32 = vld [vmem:[#allocation7 + $0x5a0] sm:$0xff] }
  0xbb   : > { %2768 = vmatprep.subr.bf16.mxu1 %v2767_v30  ;;  %v469_v27 = vld [vmem:[#allocation7 + $0x510] sm:$0xff]  ;;  %v455_v30 = vld [vmem:[#allocation7 + $0x4a0] sm:$0xff]  ;;  %v488_v33 = vld [vmem:[#allocation7 + $0x5a8] sm:$0xff]  ;;  %v2789_v35 = vpack.c.bf16 %v438_v26, %v437_v25 }
  0xbc   : > { %2738 = vmatpush3.bf16.msra.mxu0 %v2737_v36  ;;  %v284_v34 = vld [vmem:[%s3664_s1 + $0x48] sm:$0xff]  ;;  %v286_v36 = vld [vmem:[%s3664_s1 + $0x58] sm:$0xff]  ;;  %v439_v39 = vld [vmem:[#allocation7 + $0x420] sm:$0xff] }
  0xbd   : > { %2740 = vmatprep.subr.bf16.mxu0 %v2739_v38  ;;  %v2791_v38 = vpack.c.bf16 %v456_v31, %v455_v30  ;;  %v440_v40 = vld [vmem:[#allocation7 + $0x428] sm:$0xff]  ;;  %v471_v41 = vld [vmem:[#allocation7 + $0x520] sm:$0xff]  ;;  %v457_v44 = vld [vmem:[#allocation7 + $0x4b0] sm:$0xff] }
  0xbe   : > { %2770 = vmatpush3.bf16.msra.mxu1 %v2769_v37  ;;  %v2821_v37 = vpack.c.bf16 %v470_v29, %v469_v27  ;;  %v472_v43 = vld [vmem:[#allocation7 + $0x528] sm:$0xff]  ;;  %v458_v45 = vld [vmem:[#allocation7 + $0x4b8] sm:$0xff]  ;;  %v489_v46 = vld [vmem:[#allocation7 + $0x5b0] sm:$0xff] }
  0xbf   : > { %2772 = vmatprep.subr.bf16.mxu1 %v2771_v42  ;;  %v2823_v42 = vpack.c.bf16 %v488_v33, %v487_v32  ;;  %v490_v47 = vld [vmem:[#allocation7 + $0x5b8] sm:$0xff]  ;;  %v441_v51 = vld [vmem:[#allocation7 + $0x430] sm:$0xff]  ;;  %v459_v56 = vld [vmem:[#allocation7 + $0x4c0] sm:$0xff] }
  0xc0   : > { %2742 = vmatpush3.bf16.msra.mxu0 %v2741_v48  ;;  %v2793_v48 = vpack.c.bf16 %v440_v40, %v439_v39  ;;  %v442_v52 = vld [vmem:[#allocation7 + $0x438] sm:$0xff]  ;;  %v473_v53 = vld [vmem:[#allocation7 + $0x530] sm:$0xff]  ;;  %v460_v57 = vld [vmem:[#allocation7 + $0x4c8] sm:$0xff] }
  0xc1   : > { %2744 = vmatprep.subr.bf16.mxu0 %v2743_v50  ;;  %v2795_v50 = vpack.c.bf16 %v458_v45, %v457_v44  ;;  %v474_v55 = vld [vmem:[#allocation7 + $0x538] sm:$0xff]  ;;  %v491_v58 = vld [vmem:[#allocation7 + $0x5c0] sm:$0xff]  ;;  %v492_v59 = vld [vmem:[#allocation7 + $0x5c8] sm:$0xff] }
  0xc2   : > { %2774 = vmatpush3.bf16.msra.mxu1 %v2773_v49  ;;  %v2825_v49 = vpack.c.bf16 %v472_v43, %v471_v41  ;;  %v443_v63 = vld [vmem:[#allocation7 + $0x440] sm:$0xff]  ;;  %v444_v0 = vld [vmem:[#allocation7 + $0x448] sm:$0xff]  ;;  %v461_v4 = vld [vmem:[#allocation7 + $0x4d0] sm:$0xff] }
  0xc3   : > { %2776 = vmatprep.subr.bf16.mxu1 %v2775_v54  ;;  %v2827_v54 = vpack.c.bf16 %v490_v47, %v489_v46  ;;  %v475_v1 = vld [vmem:[#allocation7 + $0x540] sm:$0xff]  ;;  %v476_v3 = vld [vmem:[#allocation7 + $0x548] sm:$0xff]  ;;  %v462_v5 = vld [vmem:[#allocation7 + $0x4d8] sm:$0xff] }
  0xc4   : > { %2746 = vmatpush3.bf16.msra.mxu0 %v2745_v60  ;;  %v2797_v60 = vpack.c.bf16 %v442_v52, %v441_v51  ;;  %v493_v6 = vld [vmem:[#allocation7 + $0x5d0] sm:$0xff]  ;;  %v494_v7 = vld [vmem:[#allocation7 + $0x5d8] sm:$0xff]  ;;  %v463_v16 = vld [vmem:[#allocation7 + $0x4e0] sm:$0xff] }
  0xc5   : > { %2748 = vmatprep.subr.bf16.mxu0 %v2747_v62  ;;  %v2799_v62 = vpack.c.bf16 %v460_v57, %v459_v56  ;;  %v445_v11 = vld [vmem:[#allocation7 + $0x450] sm:$0xff]  ;;  %v446_v12 = vld [vmem:[#allocation7 + $0x458] sm:$0xff]  ;;  %v464_v17 = vld [vmem:[#allocation7 + $0x4e8] sm:$0xff] }
  0xc6   : > { %2778 = vmatpush3.bf16.msra.mxu1 %v2777_v61  ;;  %v2829_v61 = vpack.c.bf16 %v474_v55, %v473_v53  ;;  %v477_v13 = vld [vmem:[#allocation7 + $0x550] sm:$0xff]  ;;  %v478_v15 = vld [vmem:[#allocation7 + $0x558] sm:$0xff]  ;;  %v495_v18 = vld [vmem:[#allocation7 + $0x5e0] sm:$0xff] }
  0xc7   : > { %2780 = vmatprep.subr.bf16.mxu1 %v2779_v2  ;;  %v2831_v2 = vpack.c.bf16 %v492_v59, %v491_v58  ;;  %v496_v19 = vld [vmem:[#allocation7 + $0x5e8] sm:$0xff]  ;;  %v479_v25 = vld [vmem:[#allocation7 + $0x560] sm:$0xff]  ;;  %v466_v29 = vld [vmem:[#allocation7 + $0x4f8] sm:$0xff] }
  0xc8   : > { %2750 = vmatpush3.bf16.msra.mxu0 %v2749_v8  ;;  %v2801_v8 = vpack.c.bf16 %v444_v0, %v443_v63  ;;  %v2839_v26 = vpack.c.bf16 %v496_v19, %v495_v18  ;;  %v480_v27 = vld [vmem:[#allocation7 + $0x568] sm:$0xff]  ;;  %v497_v30 = vld [vmem:[#allocation7 + $0x5f0] sm:$0xff]  ;;  %v498_v31 = vld [vmem:[#allocation7 + $0x5f8] sm:$0xff] }
  0xc9   : > { %2784 = vmatprep.subr.bf16.mxu0 %v2783_v10  ;;  %v2803_v10 = vpack.c.bf16 %v462_v5, %v461_v4  ;;  %v2841_v33 = vpack.c.bf16 %v480_v27, %v479_v25  ;;  %v482_v39 = vld [vmem:[#allocation7 + $0x578] sm:$0xff]  ;;  %v515_v40 = vld [vmem:[#allocation7 + $0x680] sm:$0xff]  ;;  %v516_v41 = vld [vmem:[#allocation7 + $0x688] sm:$0xff] }
  0xca   : > { %2782 = vmatpush3.bf16.msra.mxu1 %v2781_v9  ;;  %v2833_v9 = vpack.c.bf16 %v476_v3, %v475_v1  ;;  %v548_v43 = vld [vmem:[#allocation7 + $0x788] sm:$0xff]  ;;  %v2847_v46 = vpack.c.bf16 %v516_v41, %v515_v40  ;;  %v499_v47 = vld [vmem:[#allocation7 + $0x600] sm:$0xff]  ;;  %v517_v52 = vld [vmem:[#allocation7 + $0x690] sm:$0xff] }
  0xcb   : > { %2816 = vmatprep.subr.bf16.mxu1 %v2815_v14  ;;  %1028 = vmatmul.mubr.f32.vlgmr.msra.gmra.mrb[2].mxu0 %v279_v20  ;;  %v2835_v14 = vpack.c.bf16 %v494_v7, %v493_v6  ;;  %v2805_v20 = vpack.c.bf16 %v446_v12, %v445_v11  ;;  %v532_v51 = vld [vmem:[#allocation7 + $0x708] sm:$0xff]  ;;  %v518_v53 = vld [vmem:[#allocation7 + $0x698] sm:$0xff]  ;;  %v283_v56 = vld [vmem:[%s3664_s1 + $0x40] sm:$0xff] }
  0xcc   : > { %2786 = vmatpush3.bf16.msra.mxu0 %v2785_v21  ;;  %1167 = vmatprep.mubr.f32.mxu0 %v284_v34  ;;  %v2837_v21 = vpack.c.bf16 %v478_v15, %v477_v13  ;;  %v550_v55 = vld [vmem:[#allocation7 + $0x798] sm:$0xff]  ;;  %v285_v58 = vld [vmem:[%s3664_s1 + $0x50] sm:$0xff]  ;;  %v520_v3 = vld [vmem:[#allocation7 + $0x6a8] sm:$0xff] }
  0xcd   : > { %1098 = vmatmul.mubr.f32.vlgmr.msra.gmra.mrb[2].mxu1 %v281_v22  ;;  %2788 = vmatprep.subr.bf16.mxu0 %v2787_v24  ;;  %v2807_v22 = vpack.c.bf16 %v464_v17, %v463_v16  ;;  %v448_v24 = vld [vmem:[#allocation7 + $0x468] sm:$0xff]  ;;  %v533_v63 = vld [vmem:[#allocation7 + $0x710] sm:$0xff]  ;;  %v534_v1 = vld [vmem:[#allocation7 + $0x718] sm:$0xff] }
  0xce   : > { %2818 = vmatpush3.bf16.msra.mxu1 %v2817_v23  ;;  %1237 = vmatprep.mubr.f32.mxu1 %v286_v36  ;;  %v447_v23 = vld [vmem:[#allocation7 + $0x460] sm:$0xff]  ;;  %v450_v36 = vld [vmem:[#allocation7 + $0x478] sm:$0xff]  ;;  %v552_v5 = vld [vmem:[#allocation7 + $0x7a8] sm:$0xff] }
  0xcf   : > { %2820 = vmatprep.subr.bf16.mxu1 %v2819_v28  ;;  %v465_v28 = vld [vmem:[#allocation7 + $0x4f0] sm:$0xff]  ;;  %v2809_v32 = vpack.c.bf16 %v448_v24, %v447_v23  ;;  %v551_v4 = vld [vmem:[#allocation7 + $0x7a0] sm:$0xff]  ;;  %v288_v6 = vld [vmem:[%s3664_s1 + $0x68] sm:$0xff] }
  0xd0   : > { %2790 = vmatpush3.bf16.msra.mxu0 %v2789_v35  ;;  %v2811_v34 = vpack.c.bf16 %v466_v29, %v465_v28  ;;  %v449_v35 = vld [vmem:[#allocation7 + $0x470] sm:$0xff]  ;;  %v503_v11 = vld [vmem:[#allocation7 + $0x620] sm:$0xff]  ;;  %v504_v12 = vld [vmem:[#allocation7 + $0x628] sm:$0xff] }
  0xd1   : > { %2792 = vmatprep.subr.bf16.mxu0 %v2791_v38  ;;  %v2843_v38 = vpack.c.bf16 %v498_v31, %v497_v30  ;;  %v2813_v44 = vpack.c.bf16 %v450_v36, %v449_v35  ;;  %v535_v13 = vld [vmem:[#allocation7 + $0x720] sm:$0xff]  ;;  %v536_v15 = vld [vmem:[#allocation7 + $0x728] sm:$0xff]  ;;  %v521_v16 = vld [vmem:[#allocation7 + $0x6b0] sm:$0xff] }
  0xd2   : > { %2822 = vmatpush3.bf16.msra.mxu1 %v2821_v37  ;;  %v481_v37 = vld [vmem:[#allocation7 + $0x570] sm:$0xff]  ;;  %v522_v17 = vld [vmem:[#allocation7 + $0x6b8] sm:$0xff]  ;;  %v523_v28 = vld [vmem:[#allocation7 + $0x6c0] sm:$0xff] }
  0xd3   : > { %2824 = vmatprep.subr.bf16.mxu1 %v2823_v42  ;;  %v547_v42 = vld [vmem:[#allocation7 + $0x780] sm:$0xff]  ;;  %v2845_v45 = vpack.c.bf16 %v482_v39, %v481_v37  ;;  %v553_v18 = vld [vmem:[#allocation7 + $0x7b0] sm:$0xff]  ;;  %v554_v19 = vld [vmem:[#allocation7 + $0x7b8] sm:$0xff] }
  0xd4   : > { %2794 = vmatpush3.bf16.msra.mxu0 %v2793_v48  ;;  %v500_v48 = vld [vmem:[#allocation7 + $0x608] sm:$0xff]  ;;  %v505_v23 = vld [vmem:[#allocation7 + $0x630] sm:$0xff]  ;;  %v506_v24 = vld [vmem:[#allocation7 + $0x638] sm:$0xff] }
  0xd5   : > { %2796 = vmatprep.subr.bf16.mxu0 %v2795_v50  ;;  %v2879_v50 = vpack.c.bf16 %v548_v43, %v547_v42  ;;  %v2849_v57 = vpack.c.bf16 %v500_v48, %v499_v47  ;;  %v537_v25 = vld [vmem:[#allocation7 + $0x730] sm:$0xff]  ;;  %v538_v27 = vld [vmem:[#allocation7 + $0x738] sm:$0xff]  ;;  %v524_v29 = vld [vmem:[#allocation7 + $0x6c8] sm:$0xff] }
  0xd6   : > { %2826 = vmatpush3.bf16.msra.mxu1 %v2825_v49  ;;  %v531_v49 = vld [vmem:[#allocation7 + $0x700] sm:$0xff]  ;;  %v556_v31 = vld [vmem:[#allocation7 + $0x7c8] sm:$0xff]  ;;  %v525_v40 = vld [vmem:[#allocation7 + $0x6d0] sm:$0xff] }
  0xd7   : > { %2828 = vmatprep.subr.bf16.mxu1 %v2827_v54  ;;  %v549_v54 = vld [vmem:[#allocation7 + $0x790] sm:$0xff]  ;;  %v2881_v59 = vpack.c.bf16 %v532_v51, %v531_v49  ;;  %v555_v30 = vld [vmem:[#allocation7 + $0x7c0] sm:$0xff]  ;;  %v508_v36 = vld [vmem:[#allocation7 + $0x648] sm:$0xff] }
  0xd8   : > { %2798 = vmatpush3.bf16.msra.mxu0 %v2797_v60  ;;  %v2851_v60 = vpack.c.bf16 %v518_v53, %v517_v52  ;;  %v2883_v0 = vpack.c.bf16 %v550_v55, %v549_v54  ;;  %v507_v35 = vld [vmem:[#allocation7 + $0x640] sm:$0xff]  ;;  %v540_v39 = vld [vmem:[#allocation7 + $0x748] sm:$0xff]  ;;  %v526_v41 = vld [vmem:[#allocation7 + $0x6d8] sm:$0xff] }
  0xd9   : > { %2800 = vmatprep.subr.bf16.mxu0 %v2799_v62  ;;  %v502_v62 = vld [vmem:[#allocation7 + $0x618] sm:$0xff]  ;;  %v539_v37 = vld [vmem:[#allocation7 + $0x740] sm:$0xff]  ;;  %v557_v42 = vld [vmem:[#allocation7 + $0x7d0] sm:$0xff] }
  0xda   : > { %2830 = vmatpush3.bf16.msra.mxu1 %v2829_v61  ;;  %v501_v61 = vld [vmem:[#allocation7 + $0x610] sm:$0xff]  ;;  %v558_v43 = vld [vmem:[#allocation7 + $0x7d8] sm:$0xff]  ;;  %v527_v52 = vld [vmem:[#allocation7 + $0x6e0] sm:$0xff] }
  0xdb   : > { %2832 = vmatprep.subr.bf16.mxu1 %v2831_v2  ;;  %v519_v2 = vld [vmem:[#allocation7 + $0x6a0] sm:$0xff]  ;;  %v2853_v7 = vpack.c.bf16 %v502_v62, %v501_v61  ;;  %v509_v47 = vld [vmem:[#allocation7 + $0x650] sm:$0xff]  ;;  %v510_v48 = vld [vmem:[#allocation7 + $0x658] sm:$0xff] }
  0xdc   : > { %2802 = vmatpush3.bf16.msra.mxu0 %v2801_v8  ;;  %v290_v8 = vld [vmem:[%s3664_s1 + $0x78] sm:$0xff]  ;;  %v541_v49 = vld [vmem:[#allocation7 + $0x750] sm:$0xff]  ;;  %v528_v53 = vld [vmem:[#allocation7 + $0x6e8] sm:$0xff] }
  0xdd   : > { %2804 = vmatprep.subr.bf16.mxu0 %v2803_v10  ;;  %v2855_v10 = vpack.c.bf16 %v520_v3, %v519_v2  ;;  %v542_v51 = vld [vmem:[#allocation7 + $0x758] sm:$0xff]  ;;  %v559_v54 = vld [vmem:[#allocation7 + $0x7e0] sm:$0xff]  ;;  %v560_v55 = vld [vmem:[#allocation7 + $0x7e8] sm:$0xff] }
  0xde   : > { %2834 = vmatpush3.bf16.msra.mxu1 %v2833_v9  ;;  %v2885_v9 = vpack.c.bf16 %v534_v1, %v533_v63  ;;  %v543_v61 = vld [vmem:[#allocation7 + $0x760] sm:$0xff]  ;;  %v2903_v62 = vpack.c.bf16 %v560_v55, %v559_v54  ;;  %v544_v63 = vld [vmem:[#allocation7 + $0x768] sm:$0xff]  ;;  %v530_v1 = vld [vmem:[#allocation7 + $0x6f8] sm:$0xff] }
  0xdf   : > { %2836 = vmatprep.subr.bf16.mxu1 %v2835_v14  ;;  %v2887_v14 = vpack.c.bf16 %v552_v5, %v551_v4  ;;  %v561_v2 = vld [vmem:[#allocation7 + $0x7f0] sm:$0xff]  ;;  %v562_v3 = vld [vmem:[#allocation7 + $0x7f8] sm:$0xff]  ;;  %v2905_v5 = vpack.c.bf16 %v544_v63, %v543_v61 }
  0xe0   : > { %2806 = vmatpush3.bf16.msra.mxu0 %v2805_v20  ;;  %v2857_v20 = vpack.c.bf16 %v504_v12, %v503_v11  ;;  %v546_v11 = vld [vmem:[#allocation7 + $0x778] sm:$0xff]  ;;  %v579_v12 = vld [vmem:[#allocation7 + $0x880] sm:$0xff]  ;;  %v617_v54 = vld [vmem:[#allocation7 + $0x9b0] sm:$0xff] }
  0xe1   : > { %2808 = vmatprep.subr.bf16.mxu0 %v2807_v22  ;;  %v2859_v22 = vpack.c.bf16 %v522_v17, %v521_v16  ;;  %v618_v55 = vld [vmem:[#allocation7 + $0x9b8] sm:$0xff]  ;;  %v601_v61 = vld [vmem:[#allocation7 + $0x930] sm:$0xff] }
  0xe2   : > { %2838 = vmatpush3.bf16.msra.mxu1 %v2837_v21  ;;  %v2889_v21 = vpack.c.bf16 %v536_v15, %v535_v13  ;;  %v580_v13 = vld [vmem:[#allocation7 + $0x888] sm:$0xff]  ;;  %v602_v63 = vld [vmem:[#allocation7 + $0x938] sm:$0xff] }
  0xe3   : > { %2840 = vmatprep.subr.bf16.mxu1 %v2839_v26  ;;  %v2891_v26 = vpack.c.bf16 %v554_v19, %v553_v18  ;;  %v612_v15 = vld [vmem:[#allocation7 + $0x988] sm:$0xff]  ;;  %v2911_v18 = vpack.c.bf16 %v580_v13, %v579_v12  ;;  %v563_v19 = vld [vmem:[#allocation7 + $0x800] sm:$0xff]  ;;  %v589_v12 = vld [vmem:[#allocation7 + $0x8d0] sm:$0xff] }
  0xe4   : > { %2810 = vmatpush3.bf16.msra.mxu0 %v2809_v32  ;;  %v2861_v32 = vpack.c.bf16 %v506_v24, %v505_v23  ;;  %v596_v23 = vld [vmem:[#allocation7 + $0x908] sm:$0xff]  ;;  %v581_v24 = vld [vmem:[#allocation7 + $0x890] sm:$0xff]  ;;  %v590_v13 = vld [vmem:[#allocation7 + $0x8d8] sm:$0xff] }
  0xe5   : > { %2812 = vmatprep.subr.bf16.mxu0 %v2811_v34  ;;  %v2863_v34 = vpack.c.bf16 %v524_v29, %v523_v28  ;;  %v287_v28 = vld [vmem:[%s3664_s1 + $0x60] sm:$0xff] }
  0xe6   : > { %2842 = vmatpush3.bf16.msra.mxu1 %v2841_v33  ;;  %v2893_v33 = vpack.c.bf16 %v538_v27, %v537_v25  ;;  %v582_v25 = vld [vmem:[#allocation7 + $0x898] sm:$0xff] }
  0xe7   : > { %2844 = vmatprep.subr.bf16.mxu1 %v2843_v38  ;;  %v2895_v38 = vpack.c.bf16 %v556_v31, %v555_v30  ;;  %v614_v27 = vld [vmem:[#allocation7 + $0x998] sm:$0xff]  ;;  %v289_v30 = vld [vmem:[%s3664_s1 + $0x70] sm:$0xff] }
  0xe8   : > { %2814 = vmatpush3.bf16.msra.mxu0 %v2813_v44  ;;  %v2865_v44 = vpack.c.bf16 %v508_v36, %v507_v35  ;;  %v597_v35 = vld [vmem:[#allocation7 + $0x910] sm:$0xff] }
  0xe9   : > { %2848 = vmatprep.subr.bf16.mxu0 %v2847_v46  ;;  %v2867_v46 = vpack.c.bf16 %v526_v41, %v525_v40  ;;  %v615_v40 = vld [vmem:[#allocation7 + $0x9a0] sm:$0xff]  ;;  %v616_v41 = vld [vmem:[#allocation7 + $0x9a8] sm:$0xff] }
  0xea   : > { %2846 = vmatpush3.bf16.msra.mxu1 %v2845_v45  ;;  %v2897_v45 = vpack.c.bf16 %v540_v39, %v539_v37  ;;  %v598_v37 = vld [vmem:[#allocation7 + $0x918] sm:$0xff]  ;;  %v584_v39 = vld [vmem:[#allocation7 + $0x8a8] sm:$0xff] }
  0xeb   : > { %2880 = vmatprep.subr.bf16.mxu1 %v2879_v50  ;;  %1168 = vmatmul.mubr.f32.vlgmr.msra.gmra.mrb[4].mxu0 %v283_v56  ;;  %v2899_v50 = vpack.c.bf16 %v558_v43, %v557_v42  ;;  %v2869_v56 = vpack.c.bf16 %v510_v48, %v509_v47  ;;  %v292_v42 = vld [vmem:[%s3664_s1 + $0x88] sm:$0xff]  ;;  %v567_v47 = vld [vmem:[#allocation7 + $0x820] sm:$0xff] }
  0xec   : > { %2850 = vmatpush3.bf16.msra.mxu0 %v2849_v57  ;;  %1307 = vmatprep.mubr.f32.mxu0 %v288_v6  ;;  %v2901_v57 = vpack.c.bf16 %v542_v51, %v541_v49  ;;  %v568_v48 = vld [vmem:[#allocation7 + $0x828] sm:$0xff]  ;;  %v599_v49 = vld [vmem:[#allocation7 + $0x920] sm:$0xff] }
  0xed   : > { %1238 = vmatmul.mubr.f32.vlgmr.msra.gmra.mrb[4].mxu1 %v285_v58  ;;  %2852 = vmatprep.subr.bf16.mxu0 %v2851_v60  ;;  %v2871_v58 = vpack.c.bf16 %v528_v53, %v527_v52  ;;  %v512_v60 = vld [vmem:[#allocation7 + $0x668] sm:$0xff]  ;;  %v585_v52 = vld [vmem:[#allocation7 + $0x8b0] sm:$0xff]  ;;  %v586_v53 = vld [vmem:[#allocation7 + $0x8b8] sm:$0xff] }
  0xee   : > { %2882 = vmatpush3.bf16.msra.mxu1 %v2881_v59  ;;  %1377 = vmatprep.mubr.f32.mxu1 %v290_v8  ;;  %v511_v59 = vld [vmem:[#allocation7 + $0x660] sm:$0xff]  ;;  %v514_v8 = vld [vmem:[#allocation7 + $0x678] sm:$0xff]  ;;  %v600_v51 = vld [vmem:[#allocation7 + $0x928] sm:$0xff] }
  0xef   : > { %2884 = vmatprep.subr.bf16.mxu1 %v2883_v0  ;;  %v529_v0 = vld [vmem:[#allocation7 + $0x6f0] sm:$0xff]  ;;  %v2873_v4 = vpack.c.bf16 %v512_v60, %v511_v59  ;;  %v570_v60 = vld [vmem:[#allocation7 + $0x838] sm:$0xff] }
  0xf0   : > { %2854 = vmatpush3.bf16.msra.mxu0 %v2853_v7  ;;  %v2875_v6 = vpack.c.bf16 %v530_v1, %v529_v0  ;;  %v513_v7 = vld [vmem:[#allocation7 + $0x670] sm:$0xff]  ;;  %v587_v0 = vld [vmem:[#allocation7 + $0x8c0] sm:$0xff]  ;;  %v588_v1 = vld [vmem:[#allocation7 + $0x8c8] sm:$0xff] }
  0xf1   : > { %2856 = vmatprep.subr.bf16.mxu0 %v2855_v10  ;;  %v2907_v10 = vpack.c.bf16 %v562_v3, %v561_v2  ;;  %v2877_v16 = vpack.c.bf16 %v514_v8, %v513_v7  ;;  %v569_v59 = vld [vmem:[#allocation7 + $0x830] sm:$0xff]  ;;  %v619_v2 = vld [vmem:[#allocation7 + $0x9c0] sm:$0xff]  ;;  %v620_v3 = vld [vmem:[#allocation7 + $0x9c8] sm:$0xff] }
  0xf2   : > { %2886 = vmatpush3.bf16.msra.mxu1 %v2885_v9  ;;  %v545_v9 = vld [vmem:[#allocation7 + $0x770] sm:$0xff]  ;;  %v571_v7 = vld [vmem:[#allocation7 + $0x840] sm:$0xff]  ;;  %v572_v8 = vld [vmem:[#allocation7 + $0x848] sm:$0xff] }
  0xf3   : > { %2888 = vmatprep.subr.bf16.mxu1 %v2887_v14  ;;  %v611_v14 = vld [vmem:[#allocation7 + $0x980] sm:$0xff]  ;;  %v2909_v17 = vpack.c.bf16 %v546_v11, %v545_v9  ;;  %v604_v11 = vld [vmem:[#allocation7 + $0x948] sm:$0xff] }
  0xf4   : > { %2858 = vmatpush3.bf16.msra.mxu0 %v2857_v20  ;;  %v564_v20 = vld [vmem:[#allocation7 + $0x808] sm:$0xff]  ;;  %v603_v9 = vld [vmem:[#allocation7 + $0x940] sm:$0xff] }
  0xf5   : > { %2860 = vmatprep.subr.bf16.mxu0 %v2859_v22  ;;  %v2943_v22 = vpack.c.bf16 %v612_v15, %v611_v14  ;;  %v2913_v29 = vpack.c.bf16 %v564_v20, %v563_v19  ;;  %v621_v14 = vld [vmem:[#allocation7 + $0x9d0] sm:$0xff]  ;;  %v622_v15 = vld [vmem:[#allocation7 + $0x9d8] sm:$0xff] }
  0xf6   : > { %2890 = vmatpush3.bf16.msra.mxu1 %v2889_v21  ;;  %v595_v21 = vld [vmem:[#allocation7 + $0x900] sm:$0xff]  ;;  %v573_v19 = vld [vmem:[#allocation7 + $0x850] sm:$0xff]  ;;  %v574_v20 = vld [vmem:[#allocation7 + $0x858] sm:$0xff] }
  0xf7   : > { %2892 = vmatprep.subr.bf16.mxu1 %v2891_v26  ;;  %v613_v26 = vld [vmem:[#allocation7 + $0x990] sm:$0xff]  ;;  %v2945_v31 = vpack.c.bf16 %v596_v23, %v595_v21  ;;  %v606_v23 = vld [vmem:[#allocation7 + $0x958] sm:$0xff] }
  0xf8   : > { %2862 = vmatpush3.bf16.msra.mxu0 %v2861_v32  ;;  %v2915_v32 = vpack.c.bf16 %v582_v25, %v581_v24  ;;  %v2947_v36 = vpack.c.bf16 %v614_v27, %v613_v26  ;;  %v605_v21 = vld [vmem:[#allocation7 + $0x950] sm:$0xff]  ;;  %v591_v24 = vld [vmem:[#allocation7 + $0x8e0] sm:$0xff]  ;;  %v592_v25 = vld [vmem:[#allocation7 + $0x8e8] sm:$0xff] }
  0xf9   : > { %2864 = vmatprep.subr.bf16.mxu0 %v2863_v34  ;;  %v566_v34 = vld [vmem:[#allocation7 + $0x818] sm:$0xff]  ;;  %v623_v26 = vld [vmem:[#allocation7 + $0x9e0] sm:$0xff]  ;;  %v624_v27 = vld [vmem:[#allocation7 + $0x9e8] sm:$0xff] }
  0xfa   : > { %2894 = vmatpush3.bf16.msra.mxu1 %v2893_v33  ;;  %v565_v33 = vld [vmem:[#allocation7 + $0x810] sm:$0xff] }
  0xfb   : > { %2896 = vmatprep.subr.bf16.mxu1 %v2895_v38  ;;  %v583_v38 = vld [vmem:[#allocation7 + $0x8a0] sm:$0xff]  ;;  %v2917_v43 = vpack.c.bf16 %v566_v34, %v565_v33  ;;  %v2967_v34 = vpack.c.bf16 %v624_v27, %v623_v26  ;;  %v681_v26 = vld [vmem:[#allocation7 + $0xbb0] sm:$0xff]  ;;  %v682_v27 = vld [vmem:[#allocation7 + $0xbb8] sm:$0xff] }
  0xfc   : > { %2866 = vmatpush3.bf16.msra.mxu0 %v2865_v44  ;;  %v294_v44 = vld [vmem:[%s3664_s1 + $0x98] sm:$0xff]  ;;  %v607_v33 = vld [vmem:[#allocation7 + $0x960] sm:$0xff] }
  0xfd   : > { %2868 = vmatprep.subr.bf16.mxu0 %v2867_v46  ;;  %v2919_v46 = vpack.c.bf16 %v584_v39, %v583_v38  ;;  %v625_v38 = vld [vmem:[#allocation7 + $0x9f0] sm:$0xff]  ;;  %v626_v39 = vld [vmem:[#allocation7 + $0x9f8] sm:$0xff] }
  0xfe   : > { %2898 = vmatpush3.bf16.msra.mxu1 %v2897_v45  ;;  %v2949_v45 = vpack.c.bf16 %v598_v37, %v597_v35  ;;  %v608_v35 = vld [vmem:[#allocation7 + $0x968] sm:$0xff]  ;;  %v594_v37 = vld [vmem:[#allocation7 + $0x8f8] sm:$0xff] }
  0xff   : > { %2900 = vmatprep.subr.bf16.mxu1 %v2899_v50  ;;  %v2951_v50 = vpack.c.bf16 %v616_v41, %v615_v40  ;;  %v2969_v41 = vpack.c.bf16 %v608_v35, %v607_v33  ;;  %v665_v33 = vld [vmem:[#allocation7 + $0xb30] sm:$0xff]  ;;  %v666_v35 = vld [vmem:[#allocation7 + $0xb38] sm:$0xff] }
 0x100   : > { %2870 = vmatpush3.bf16.msra.mxu0 %v2869_v56  ;;  %v2921_v56 = vpack.c.bf16 %v568_v48, %v567_v47  ;;  %v610_v47 = vld [vmem:[#allocation7 + $0x978] sm:$0xff]  ;;  %v643_v48 = vld [vmem:[#allocation7 + $0xa80] sm:$0xff] }
 0x101   : > { %2872 = vmatprep.subr.bf16.mxu0 %v2871_v58  ;;  %v2923_v58 = vpack.c.bf16 %v586_v53, %v585_v52 }
 0x102   : > { %2902 = vmatpush3.bf16.msra.mxu1 %v2901_v57  ;;  %v2953_v57 = vpack.c.bf16 %v600_v51, %v599_v49  ;;  %v644_v49 = vld [vmem:[#allocation7 + $0xa88] sm:$0xff] }
 0x103   : > { %2904 = vmatprep.subr.bf16.mxu1 %v2903_v62  ;;  %v2955_v62 = vpack.c.bf16 %v618_v55, %v617_v54  ;;  %v676_v51 = vld [vmem:[#allocation7 + $0xb88] sm:$0xff]  ;;  %v2975_v54 = vpack.c.bf16 %v644_v49, %v643_v48  ;;  %v627_v55 = vld [vmem:[#allocation7 + $0xa00] sm:$0xff]  ;;  %v653_v48 = vld [vmem:[#allocation7 + $0xad0] sm:$0xff] }
 0x104   : > { %2874 = vmatpush3.bf16.msra.mxu0 %v2873_v4  ;;  %v2925_v4 = vpack.c.bf16 %v570_v60, %v569_v59  ;;  %v660_v59 = vld [vmem:[#allocation7 + $0xb08] sm:$0xff]  ;;  %v645_v60 = vld [vmem:[#allocation7 + $0xa90] sm:$0xff]  ;;  %v654_v49 = vld [vmem:[#allocation7 + $0xad8] sm:$0xff] }
 0x105   : > { %2876 = vmatprep.subr.bf16.mxu0 %v2875_v6  ;;  %v2927_v6 = vpack.c.bf16 %v588_v1, %v587_v0  ;;  %v291_v0 = vld [vmem:[%s3664_s1 + $0x80] sm:$0xff] }
 0x106   : > { %2906 = vmatpush3.bf16.msra.mxu1 %v2905_v5  ;;  %v2957_v5 = vpack.c.bf16 %v602_v63, %v601_v61  ;;  %v646_v61 = vld [vmem:[#allocation7 + $0xa98] sm:$0xff] }
 0x107   : > { %2908 = vmatprep.subr.bf16.mxu1 %v2907_v10  ;;  %v2959_v10 = vpack.c.bf16 %v620_v3, %v619_v2  ;;  %v678_v63 = vld [vmem:[#allocation7 + $0xb98] sm:$0xff]  ;;  %v293_v2 = vld [vmem:[%s3664_s1 + $0x90] sm:$0xff] }
 0x108   : > { %2878 = vmatpush3.bf16.msra.mxu0 %v2877_v16  ;;  %v2929_v16 = vpack.c.bf16 %v572_v8, %v571_v7  ;;  %v661_v7 = vld [vmem:[#allocation7 + $0xb10] sm:$0xff] }
 0x109   : > { %2912 = vmatprep.subr.bf16.mxu0 %v2911_v18  ;;  %v2931_v18 = vpack.c.bf16 %v590_v13, %v589_v12  ;;  %v679_v12 = vld [vmem:[#allocation7 + $0xba0] sm:$0xff]  ;;  %v680_v13 = vld [vmem:[#allocation7 + $0xba8] sm:$0xff] }
 0x10a   : > { %2910 = vmatpush3.bf16.msra.mxu1 %v2909_v17  ;;  %v2961_v17 = vpack.c.bf16 %v604_v11, %v603_v9  ;;  %v662_v9 = vld [vmem:[#allocation7 + $0xb18] sm:$0xff]  ;;  %v648_v11 = vld [vmem:[#allocation7 + $0xaa8] sm:$0xff] }
 0x10b   : > { %2944 = vmatprep.subr.bf16.mxu1 %v2943_v22  ;;  %1308 = vmatmul.mubr.f32.vlgmr.msra.gmra.mrb[6].mxu0 %v287_v28  ;;  %v2963_v22 = vpack.c.bf16 %v622_v15, %v621_v14  ;;  %v2933_v28 = vpack.c.bf16 %v574_v20, %v573_v19  ;;  %v296_v14 = vld [vmem:[%s3664_s1 + $0xa8] sm:$0xff]  ;;  %v631_v19 = vld [vmem:[#allocation7 + $0xa20] sm:$0xff] }
 0x10c   : > { %2914 = vmatpush3.bf16.msra.mxu0 %v2913_v29  ;;  %1447 = vmatprep.mubr.f32.mxu0 %v292_v42  ;;  %v2965_v29 = vpack.c.bf16 %v606_v23, %v605_v21  ;;  %v632_v20 = vld [vmem:[#allocation7 + $0xa28] sm:$0xff]  ;;  %v663_v21 = vld [vmem:[#allocation7 + $0xb20] sm:$0xff] }
 0x10d   : > { %1378 = vmatmul.mubr.f32.vlgmr.msra.gmra.mrb[6].mxu1 %v289_v30  ;;  %2916 = vmatprep.subr.bf16.mxu0 %v2915_v32  ;;  %v2935_v30 = vpack.c.bf16 %v592_v25, %v591_v24  ;;  %v576_v32 = vld [vmem:[#allocation7 + $0x868] sm:$0xff]  ;;  %v649_v24 = vld [vmem:[#allocation7 + $0xab0] sm:$0xff]  ;;  %v650_v25 = vld [vmem:[#allocation7 + $0xab8] sm:$0xff] }
 0x10e   : > { %2946 = vmatpush3.bf16.msra.mxu1 %v2945_v31  ;;  %1517 = vmatprep.mubr.f32.mxu1 %v294_v44  ;;  %v575_v31 = vld [vmem:[#allocation7 + $0x860] sm:$0xff]  ;;  %v578_v44 = vld [vmem:[#allocation7 + $0x878] sm:$0xff]  ;;  %v664_v23 = vld [vmem:[#allocation7 + $0xb28] sm:$0xff] }
 0x10f   : > { %2948 = vmatprep.subr.bf16.mxu1 %v2947_v36  ;;  %v593_v36 = vld [vmem:[#allocation7 + $0x8f0] sm:$0xff]  ;;  %v2937_v40 = vpack.c.bf16 %v576_v32, %v575_v31  ;;  %v634_v32 = vld [vmem:[#allocation7 + $0xa38] sm:$0xff] }
 0x110   : > { %2918 = vmatpush3.bf16.msra.mxu0 %v2917_v43  ;;  %v2939_v42 = vpack.c.bf16 %v594_v37, %v593_v36  ;;  %v577_v43 = vld [vmem:[#allocation7 + $0x870] sm:$0xff]  ;;  %v651_v36 = vld [vmem:[#allocation7 + $0xac0] sm:$0xff]  ;;  %v652_v37 = vld [vmem:[#allocation7 + $0xac8] sm:$0xff] }
 0x111   : > { %2920 = vmatprep.subr.bf16.mxu0 %v2919_v46  ;;  %v2971_v46 = vpack.c.bf16 %v626_v39, %v625_v38  ;;  %v2941_v52 = vpack.c.bf16 %v578_v44, %v577_v43  ;;  %v633_v31 = vld [vmem:[#allocation7 + $0xa30] sm:$0xff]  ;;  %v683_v38 = vld [vmem:[#allocation7 + $0xbc0] sm:$0xff]  ;;  %v684_v39 = vld [vmem:[#allocation7 + $0xbc8] sm:$0xff] }
 0x112   : > { %2950 = vmatpush3.bf16.msra.mxu1 %v2949_v45  ;;  %v609_v45 = vld [vmem:[#allocation7 + $0x970] sm:$0xff]  ;;  %v635_v43 = vld [vmem:[#allocation7 + $0xa40] sm:$0xff]  ;;  %v636_v44 = vld [vmem:[#allocation7 + $0xa48] sm:$0xff] }
 0x113   : > { %2952 = vmatprep.subr.bf16.mxu1 %v2951_v50  ;;  %v675_v50 = vld [vmem:[#allocation7 + $0xb80] sm:$0xff]  ;;  %v2973_v53 = vpack.c.bf16 %v610_v47, %v609_v45  ;;  %v668_v47 = vld [vmem:[#allocation7 + $0xb48] sm:$0xff] }
 0x114   : > { %2922 = vmatpush3.bf16.msra.mxu0 %v2921_v56  ;;  %v628_v56 = vld [vmem:[#allocation7 + $0xa08] sm:$0xff]  ;;  %v667_v45 = vld [vmem:[#allocation7 + $0xb40] sm:$0xff] }
 0x115   : > { %2924 = vmatprep.subr.bf16.mxu0 %v2923_v58  ;;  %v3007_v58 = vpack.c.bf16 %v676_v51, %v675_v50  ;;  %v2977_v1 = vpack.c.bf16 %v628_v56, %v627_v55  ;;  %v685_v50 = vld [vmem:[#allocation7 + $0xbd0] sm:$0xff]  ;;  %v686_v51 = vld [vmem:[#allocation7 + $0xbd8] sm:$0xff] }
 0x116   : > { %2954 = vmatpush3.bf16.msra.mxu1 %v2953_v57  ;;  %v659_v57 = vld [vmem:[#allocation7 + $0xb00] sm:$0xff]  ;;  %v637_v55 = vld [vmem:[#allocation7 + $0xa50] sm:$0xff]  ;;  %v638_v56 = vld [vmem:[#allocation7 + $0xa58] sm:$0xff] }
 0x117   : > { %2956 = vmatprep.subr.bf16.mxu1 %v2955_v62  ;;  %v677_v62 = vld [vmem:[#allocation7 + $0xb90] sm:$0xff]  ;;  %v3009_v3 = vpack.c.bf16 %v660_v59, %v659_v57  ;;  %v670_v59 = vld [vmem:[#allocation7 + $0xb58] sm:$0xff] }
 0x118   : > { %2926 = vmatpush3.bf16.msra.mxu0 %v2925_v4  ;;  %v2979_v4 = vpack.c.bf16 %v646_v61, %v645_v60  ;;  %v3011_v8 = vpack.c.bf16 %v678_v63, %v677_v62  ;;  %v669_v57 = vld [vmem:[#allocation7 + $0xb50] sm:$0xff]  ;;  %v655_v60 = vld [vmem:[#allocation7 + $0xae0] sm:$0xff]  ;;  %v656_v61 = vld [vmem:[#allocation7 + $0xae8] sm:$0xff] }
 0x119   : > { %2928 = vmatprep.subr.bf16.mxu0 %v2927_v6  ;;  %v630_v6 = vld [vmem:[#allocation7 + $0xa18] sm:$0xff]  ;;  %v687_v62 = vld [vmem:[#allocation7 + $0xbe0] sm:$0xff]  ;;  %v688_v63 = vld [vmem:[#allocation7 + $0xbe8] sm:$0xff] }
 0x11a   : > { %2958 = vmatpush3.bf16.msra.mxu1 %v2957_v5  ;;  %v629_v5 = vld [vmem:[#allocation7 + $0xa10] sm:$0xff] }
 0x11b   : > { %2960 = vmatprep.subr.bf16.mxu1 %v2959_v10  ;;  %v647_v10 = vld [vmem:[#allocation7 + $0xaa0] sm:$0xff]  ;;  %v2981_v15 = vpack.c.bf16 %v630_v6, %v629_v5  ;;  %v3031_v6 = vpack.c.bf16 %v688_v63, %v687_v62  ;;  %v745_v62 = vld [vmem:[#allocation7 + $0xdb0] sm:$0xff]  ;;  %v746_v63 = vld [vmem:[#allocation7 + $0xdb8] sm:$0xff] }
 0x11c   : > { %2930 = vmatpush3.bf16.msra.mxu0 %v2929_v16  ;;  %v298_v16 = vld [vmem:[%s3664_s1 + $0xb8] sm:$0xff]  ;;  %v671_v5 = vld [vmem:[#allocation7 + $0xb60] sm:$0xff] }
 0x11d   : > { %2932 = vmatprep.subr.bf16.mxu0 %v2931_v18  ;;  %v2983_v18 = vpack.c.bf16 %v648_v11, %v647_v10  ;;  %v689_v10 = vld [vmem:[#allocation7 + $0xbf0] sm:$0xff]  ;;  %v690_v11 = vld [vmem:[#allocation7 + $0xbf8] sm:$0xff] }
 0x11e   : > { %2962 = vmatpush3.bf16.msra.mxu1 %v2961_v17  ;;  %v3013_v17 = vpack.c.bf16 %v662_v9, %v661_v7  ;;  %v672_v7 = vld [vmem:[#allocation7 + $0xb68] sm:$0xff]  ;;  %v658_v9 = vld [vmem:[#allocation7 + $0xaf8] sm:$0xff] }
 0x11f   : > { %2964 = vmatprep.subr.bf16.mxu1 %v2963_v22  ;;  %v3015_v22 = vpack.c.bf16 %v680_v13, %v679_v12  ;;  %v3033_v13 = vpack.c.bf16 %v672_v7, %v671_v5  ;;  %v729_v5 = vld [vmem:[#allocation7 + $0xd30] sm:$0xff]  ;;  %v730_v7 = vld [vmem:[#allocation7 + $0xd38] sm:$0xff] }
 0x120   : > { %2934 = vmatpush3.bf16.msra.mxu0 %v2933_v28  ;;  %v2985_v28 = vpack.c.bf16 %v632_v20, %v631_v19  ;;  %v674_v19 = vld [vmem:[#allocation7 + $0xb78] sm:$0xff]  ;;  %v707_v20 = vld [vmem:[#allocation7 + $0xc80] sm:$0xff] }
 0x121   : > { %2936 = vmatprep.subr.bf16.mxu0 %v2935_v30  ;;  %v2987_v30 = vpack.c.bf16 %v650_v25, %v649_v24 }
 0x122   : > { %2966 = vmatpush3.bf16.msra.mxu1 %v2965_v29  ;;  %v3017_v29 = vpack.c.bf16 %v664_v23, %v663_v21  ;;  %v708_v21 = vld [vmem:[#allocation7 + $0xc88] sm:$0xff] }
 0x123   : > { %2968 = vmatprep.subr.bf16.mxu1 %v2967_v34  ;;  %v3019_v34 = vpack.c.bf16 %v682_v27, %v681_v26  ;;  %v740_v23 = vld [vmem:[#allocation7 + $0xd88] sm:$0xff]  ;;  %v3039_v26 = vpack.c.bf16 %v708_v21, %v707_v20  ;;  %v691_v27 = vld [vmem:[#allocation7 + $0xc00] sm:$0xff]  ;;  %v717_v20 = vld [vmem:[#allocation7 + $0xcd0] sm:$0xff] }
 0x124   : > { %2938 = vmatpush3.bf16.msra.mxu0 %v2937_v40  ;;  %v2989_v40 = vpack.c.bf16 %v634_v32, %v633_v31  ;;  %v724_v31 = vld [vmem:[#allocation7 + $0xd08] sm:$0xff]  ;;  %v709_v32 = vld [vmem:[#allocation7 + $0xc90] sm:$0xff]  ;;  %v718_v21 = vld [vmem:[#allocation7 + $0xcd8] sm:$0xff] }
 0x125   : > { %2940 = vmatprep.subr.bf16.mxu0 %v2939_v42  ;;  %v2991_v42 = vpack.c.bf16 %v652_v37, %v651_v36  ;;  %v295_v36 = vld [vmem:[%s3664_s1 + $0xa0] sm:$0xff] }
 0x126   : > { %2970 = vmatpush3.bf16.msra.mxu1 %v2969_v41  ;;  %v3021_v41 = vpack.c.bf16 %v666_v35, %v665_v33  ;;  %v710_v33 = vld [vmem:[#allocation7 + $0xc98] sm:$0xff] }
 0x127   : > { %2972 = vmatprep.subr.bf16.mxu1 %v2971_v46  ;;  %v3023_v46 = vpack.c.bf16 %v684_v39, %v683_v38  ;;  %v742_v35 = vld [vmem:[#allocation7 + $0xd98] sm:$0xff]  ;;  %v297_v38 = vld [vmem:[%s3664_s1 + $0xb0] sm:$0xff] }
 0x128   : > { %2942 = vmatpush3.bf16.msra.mxu0 %v2941_v52  ;;  %v2993_v52 = vpack.c.bf16 %v636_v44, %v635_v43  ;;  %v725_v43 = vld [vmem:[#allocation7 + $0xd10] sm:$0xff] }
 0x129   : > { %2976 = vmatprep.subr.bf16.mxu0 %v2975_v54  ;;  %v2995_v54 = vpack.c.bf16 %v654_v49, %v653_v48  ;;  %v743_v48 = vld [vmem:[#allocation7 + $0xda0] sm:$0xff]  ;;  %v744_v49 = vld [vmem:[#allocation7 + $0xda8] sm:$0xff] }
 0x12a   : > { %2974 = vmatpush3.bf16.msra.mxu1 %v2973_v53  ;;  %v3025_v53 = vpack.c.bf16 %v668_v47, %v667_v45  ;;  %v726_v45 = vld [vmem:[#allocation7 + $0xd18] sm:$0xff]  ;;  %v712_v47 = vld [vmem:[#allocation7 + $0xca8] sm:$0xff] }
 0x12b   : > { %3008 = vmatprep.subr.bf16.mxu1 %v3007_v58  ;;  %1448 = vmatmul.mubr.f32.vlgmr.msra.gmra.mrb[8].mxu0 %v291_v0  ;;  %v3027_v58 = vpack.c.bf16 %v686_v51, %v685_v50  ;;  %v2997_v0 = vpack.c.bf16 %v638_v56, %v637_v55  ;;  %v300_v50 = vld [vmem:[%s3664_s1 + $0xc8] sm:$0xff]  ;;  %v695_v55 = vld [vmem:[#allocation7 + $0xc20] sm:$0xff] }
 0x12c   : > { %2978 = vmatpush3.bf16.msra.mxu0 %v2977_v1  ;;  %1587 = vmatprep.mubr.f32.mxu0 %v296_v14  ;;  %v3029_v1 = vpack.c.bf16 %v670_v59, %v669_v57  ;;  %v696_v56 = vld [vmem:[#allocation7 + $0xc28] sm:$0xff]  ;;  %v727_v57 = vld [vmem:[#allocation7 + $0xd20] sm:$0xff] }
 0x12d   : > { %1518 = vmatmul.mubr.f32.vlgmr.msra.gmra.mrb[8].mxu1 %v293_v2  ;;  %2980 = vmatprep.subr.bf16.mxu0 %v2979_v4  ;;  %v2999_v2 = vpack.c.bf16 %v656_v61, %v655_v60  ;;  %v640_v4 = vld [vmem:[#allocation7 + $0xa68] sm:$0xff]  ;;  %v713_v60 = vld [vmem:[#allocation7 + $0xcb0] sm:$0xff]  ;;  %v714_v61 = vld [vmem:[#allocation7 + $0xcb8] sm:$0xff] }
 0x12e   : > { %3010 = vmatpush3.bf16.msra.mxu1 %v3009_v3  ;;  %1657 = vmatprep.mubr.f32.mxu1 %v298_v16  ;;  %v639_v3 = vld [vmem:[#allocation7 + $0xa60] sm:$0xff]  ;;  %v642_v16 = vld [vmem:[#allocation7 + $0xa78] sm:$0xff]  ;;  %v728_v59 = vld [vmem:[#allocation7 + $0xd28] sm:$0xff] }
 0x12f   : > { %3012 = vmatprep.subr.bf16.mxu1 %v3011_v8  ;;  %v657_v8 = vld [vmem:[#allocation7 + $0xaf0] sm:$0xff]  ;;  %v3001_v12 = vpack.c.bf16 %v640_v4, %v639_v3  ;;  %v698_v4 = vld [vmem:[#allocation7 + $0xc38] sm:$0xff] }
 0x130   : > { %2982 = vmatpush3.bf16.msra.mxu0 %v2981_v15  ;;  %v3003_v14 = vpack.c.bf16 %v658_v9, %v657_v8  ;;  %v641_v15 = vld [vmem:[#allocation7 + $0xa70] sm:$0xff]  ;;  %v715_v8 = vld [vmem:[#allocation7 + $0xcc0] sm:$0xff]  ;;  %v716_v9 = vld [vmem:[#allocation7 + $0xcc8] sm:$0xff] }
 0x131   : > { %2984 = vmatprep.subr.bf16.mxu0 %v2983_v18  ;;  %v3035_v18 = vpack.c.bf16 %v690_v11, %v689_v10  ;;  %v3005_v24 = vpack.c.bf16 %v642_v16, %v641_v15  ;;  %v697_v3 = vld [vmem:[#allocation7 + $0xc30] sm:$0xff]  ;;  %v747_v10 = vld [vmem:[#allocation7 + $0xdc0] sm:$0xff]  ;;  %v748_v11 = vld [vmem:[#allocation7 + $0xdc8] sm:$0xff] }
 0x132   : > { %3014 = vmatpush3.bf16.msra.mxu1 %v3013_v17  ;;  %v673_v17 = vld [vmem:[#allocation7 + $0xb70] sm:$0xff]  ;;  %v699_v15 = vld [vmem:[#allocation7 + $0xc40] sm:$0xff]  ;;  %v700_v16 = vld [vmem:[#allocation7 + $0xc48] sm:$0xff] }
 0x133   : > { %3016 = vmatprep.subr.bf16.mxu1 %v3015_v22  ;;  %v739_v22 = vld [vmem:[#allocation7 + $0xd80] sm:$0xff]  ;;  %v3037_v25 = vpack.c.bf16 %v674_v19, %v673_v17  ;;  %v732_v19 = vld [vmem:[#allocation7 + $0xd48] sm:$0xff] }
 0x134   : > { %2986 = vmatpush3.bf16.msra.mxu0 %v2985_v28  ;;  %v692_v28 = vld [vmem:[#allocation7 + $0xc08] sm:$0xff]  ;;  %v731_v17 = vld [vmem:[#allocation7 + $0xd40] sm:$0xff] }
 0x135   : > { %2988 = vmatprep.subr.bf16.mxu0 %v2987_v30  ;;  %v3071_v30 = vpack.c.bf16 %v740_v23, %v739_v22  ;;  %v3041_v37 = vpack.c.bf16 %v692_v28, %v691_v27  ;;  %v749_v22 = vld [vmem:[#allocation7 + $0xdd0] sm:$0xff]  ;;  %v750_v23 = vld [vmem:[#allocation7 + $0xdd8] sm:$0xff] }
 0x136   : > { %3018 = vmatpush3.bf16.msra.mxu1 %v3017_v29  ;;  %v723_v29 = vld [vmem:[#allocation7 + $0xd00] sm:$0xff]  ;;  %v701_v27 = vld [vmem:[#allocation7 + $0xc50] sm:$0xff]  ;;  %v702_v28 = vld [vmem:[#allocation7 + $0xc58] sm:$0xff] }
 0x137   : > { %3020 = vmatprep.subr.bf16.mxu1 %v3019_v34  ;;  %v741_v34 = vld [vmem:[#allocation7 + $0xd90] sm:$0xff]  ;;  %v3073_v39 = vpack.c.bf16 %v724_v31, %v723_v29  ;;  %v734_v31 = vld [vmem:[#allocation7 + $0xd58] sm:$0xff] }
 0x138   : > { %2990 = vmatpush3.bf16.msra.mxu0 %v2989_v40  ;;  %v3043_v40 = vpack.c.bf16 %v710_v33, %v709_v32  ;;  %v3075_v44 = vpack.c.bf16 %v742_v35, %v741_v34  ;;  %v733_v29 = vld [vmem:[#allocation7 + $0xd50] sm:$0xff]  ;;  %v719_v32 = vld [vmem:[#allocation7 + $0xce0] sm:$0xff]  ;;  %v720_v33 = vld [vmem:[#allocation7 + $0xce8] sm:$0xff] }
 0x139   : > { %2992 = vmatprep.subr.bf16.mxu0 %v2991_v42  ;;  %v694_v42 = vld [vmem:[#allocation7 + $0xc18] sm:$0xff]  ;;  %v751_v34 = vld [vmem:[#allocation7 + $0xde0] sm:$0xff]  ;;  %v752_v35 = vld [vmem:[#allocation7 + $0xde8] sm:$0xff] }
 0x13a   : > { %3022 = vmatpush3.bf16.msra.mxu1 %v3021_v41  ;;  %v693_v41 = vld [vmem:[#allocation7 + $0xc10] sm:$0xff] }
 0x13b   : > { %3024 = vmatprep.subr.bf16.mxu1 %v3023_v46  ;;  %v711_v46 = vld [vmem:[#allocation7 + $0xca0] sm:$0xff]  ;;  %v3045_v51 = vpack.c.bf16 %v694_v42, %v693_v41  ;;  %v3095_v42 = vpack.c.bf16 %v752_v35, %v751_v34  ;;  %v809_v34 = vld [vmem:[#allocation7 + $0xfb0] sm:$0xff]  ;;  %v810_v35 = vld [vmem:[#allocation7 + $0xfb8] sm:$0xff] }
 0x13c   : > { %2994 = vmatpush3.bf16.msra.mxu0 %v2993_v52  ;;  %v302_v52 = vld [vmem:[%s3664_s1 + $0xd8] sm:$0xff]  ;;  %v735_v41 = vld [vmem:[#allocation7 + $0xd60] sm:$0xff] }
 0x13d   : > { %2996 = vmatprep.subr.bf16.mxu0 %v2995_v54  ;;  %v3047_v54 = vpack.c.bf16 %v712_v47, %v711_v46  ;;  %v753_v46 = vld [vmem:[#allocation7 + $0xdf0] sm:$0xff]  ;;  %v754_v47 = vld [vmem:[#allocation7 + $0xdf8] sm:$0xff] }
 0x13e   : > { %3026 = vmatpush3.bf16.msra.mxu1 %v3025_v53  ;;  %v3077_v53 = vpack.c.bf16 %v726_v45, %v725_v43  ;;  %v736_v43 = vld [vmem:[#allocation7 + $0xd68] sm:$0xff]  ;;  %v722_v45 = vld [vmem:[#allocation7 + $0xcf8] sm:$0xff] }
 0x13f   : > { %3028 = vmatprep.subr.bf16.mxu1 %v3027_v58  ;;  %v3079_v58 = vpack.c.bf16 %v744_v49, %v743_v48  ;;  %v3097_v49 = vpack.c.bf16 %v736_v43, %v735_v41  ;;  %v793_v41 = vld [vmem:[#allocation7 + $0xf30] sm:$0xff]  ;;  %v794_v43 = vld [vmem:[#allocation7 + $0xf38] sm:$0xff] }
 0x140   : > { %2998 = vmatpush3.bf16.msra.mxu0 %v2997_v0  ;;  %v3049_v0 = vpack.c.bf16 %v696_v56, %v695_v55  ;;  %v738_v55 = vld [vmem:[#allocation7 + $0xd78] sm:$0xff]  ;;  %v771_v56 = vld [vmem:[#allocation7 + $0xe80] sm:$0xff] }
 0x141   : > { %3000 = vmatprep.subr.bf16.mxu0 %v2999_v2  ;;  %v3051_v2 = vpack.c.bf16 %v714_v61, %v713_v60 }
 0x142   : > { %3030 = vmatpush3.bf16.msra.mxu1 %v3029_v1  ;;  %v3081_v1 = vpack.c.bf16 %v728_v59, %v727_v57  ;;  %v772_v57 = vld [vmem:[#allocation7 + $0xe88] sm:$0xff] }
 0x143   : > { %3032 = vmatprep.subr.bf16.mxu1 %v3031_v6  ;;  %v3083_v6 = vpack.c.bf16 %v746_v63, %v745_v62  ;;  %v804_v59 = vld [vmem:[#allocation7 + $0xf88] sm:$0xff]  ;;  %v3103_v62 = vpack.c.bf16 %v772_v57, %v771_v56  ;;  %v755_v63 = vld [vmem:[#allocation7 + $0xe00] sm:$0xff]  ;;  %v781_v56 = vld [vmem:[#allocation7 + $0xed0] sm:$0xff] }
 0x144   : > { %3002 = vmatpush3.bf16.msra.mxu0 %v3001_v12  ;;  %v3053_v12 = vpack.c.bf16 %v698_v4, %v697_v3  ;;  %v788_v3 = vld [vmem:[#allocation7 + $0xf08] sm:$0xff]  ;;  %v773_v4 = vld [vmem:[#allocation7 + $0xe90] sm:$0xff]  ;;  %v782_v57 = vld [vmem:[#allocation7 + $0xed8] sm:$0xff] }
 0x145   : > { %3004 = vmatprep.subr.bf16.mxu0 %v3003_v14  ;;  %v3055_v14 = vpack.c.bf16 %v716_v9, %v715_v8  ;;  %v299_v8 = vld [vmem:[%s3664_s1 + $0xc0] sm:$0xff] }
 0x146   : > { %3034 = vmatpush3.bf16.msra.mxu1 %v3033_v13  ;;  %v3085_v13 = vpack.c.bf16 %v730_v7, %v729_v5  ;;  %v774_v5 = vld [vmem:[#allocation7 + $0xe98] sm:$0xff] }
 0x147   : > { %3036 = vmatprep.subr.bf16.mxu1 %v3035_v18  ;;  %v3087_v18 = vpack.c.bf16 %v748_v11, %v747_v10  ;;  %v806_v7 = vld [vmem:[#allocation7 + $0xf98] sm:$0xff]  ;;  %v301_v10 = vld [vmem:[%s3664_s1 + $0xd0] sm:$0xff] }
 0x148   : > { %3006 = vmatpush3.bf16.msra.mxu0 %v3005_v24  ;;  %v3057_v24 = vpack.c.bf16 %v700_v16, %v699_v15  ;;  %v789_v15 = vld [vmem:[#allocation7 + $0xf10] sm:$0xff] }
 0x149   : > { %3040 = vmatprep.subr.bf16.mxu0 %v3039_v26  ;;  %v3059_v26 = vpack.c.bf16 %v718_v21, %v717_v20  ;;  %v807_v20 = vld [vmem:[#allocation7 + $0xfa0] sm:$0xff]  ;;  %v808_v21 = vld [vmem:[#allocation7 + $0xfa8] sm:$0xff] }
 0x14a   : > { %3038 = vmatpush3.bf16.msra.mxu1 %v3037_v25  ;;  %v3089_v25 = vpack.c.bf16 %v732_v19, %v731_v17  ;;  %v790_v17 = vld [vmem:[#allocation7 + $0xf18] sm:$0xff]  ;;  %v776_v19 = vld [vmem:[#allocation7 + $0xea8] sm:$0xff] }
 0x14b   : > { %3072 = vmatprep.subr.bf16.mxu1 %v3071_v30  ;;  %1588 = vmatmul.mubr.f32.vlgmr.msra.gmra.mrb[10].mxu0 %v295_v36  ;;  %v3091_v30 = vpack.c.bf16 %v750_v23, %v749_v22  ;;  %v3061_v36 = vpack.c.bf16 %v702_v28, %v701_v27  ;;  %v304_v22 = vld [vmem:[%s3664_s1 + $0xe8] sm:$0xff]  ;;  %v759_v27 = vld [vmem:[#allocation7 + $0xe20] sm:$0xff] }
 0x14c   : > { %3042 = vmatpush3.bf16.msra.mxu0 %v3041_v37  ;;  %1727 = vmatprep.mubr.f32.mxu0 %v300_v50  ;;  %v3093_v37 = vpack.c.bf16 %v734_v31, %v733_v29  ;;  %v760_v28 = vld [vmem:[#allocation7 + $0xe28] sm:$0xff]  ;;  %v791_v29 = vld [vmem:[#allocation7 + $0xf20] sm:$0xff] }
 0x14d   : > { %1658 = vmatmul.mubr.f32.vlgmr.msra.gmra.mrb[10].mxu1 %v297_v38  ;;  %3044 = vmatprep.subr.bf16.mxu0 %v3043_v40  ;;  %v3063_v38 = vpack.c.bf16 %v720_v33, %v719_v32  ;;  %v704_v40 = vld [vmem:[#allocation7 + $0xc68] sm:$0xff]  ;;  %v777_v32 = vld [vmem:[#allocation7 + $0xeb0] sm:$0xff]  ;;  %v778_v33 = vld [vmem:[#allocation7 + $0xeb8] sm:$0xff] }
 0x14e   : > { %3074 = vmatpush3.bf16.msra.mxu1 %v3073_v39  ;;  %1797 = vmatprep.mubr.f32.mxu1 %v302_v52  ;;  %v703_v39 = vld [vmem:[#allocation7 + $0xc60] sm:$0xff]  ;;  %v706_v52 = vld [vmem:[#allocation7 + $0xc78] sm:$0xff]  ;;  %v792_v31 = vld [vmem:[#allocation7 + $0xf28] sm:$0xff] }
 0x14f   : > { %3076 = vmatprep.subr.bf16.mxu1 %v3075_v44  ;;  %v721_v44 = vld [vmem:[#allocation7 + $0xcf0] sm:$0xff]  ;;  %v3065_v48 = vpack.c.bf16 %v704_v40, %v703_v39  ;;  %v762_v40 = vld [vmem:[#allocation7 + $0xe38] sm:$0xff] }
 0x150   : > { %3046 = vmatpush3.bf16.msra.mxu0 %v3045_v51  ;;  %v3067_v50 = vpack.c.bf16 %v722_v45, %v721_v44  ;;  %v705_v51 = vld [vmem:[#allocation7 + $0xc70] sm:$0xff]  ;;  %v779_v44 = vld [vmem:[#allocation7 + $0xec0] sm:$0xff]  ;;  %v780_v45 = vld [vmem:[#allocation7 + $0xec8] sm:$0xff] }
 0x151   : > { %3048 = vmatprep.subr.bf16.mxu0 %v3047_v54  ;;  %v3099_v54 = vpack.c.bf16 %v754_v47, %v753_v46  ;;  %v3069_v60 = vpack.c.bf16 %v706_v52, %v705_v51  ;;  %v761_v39 = vld [vmem:[#allocation7 + $0xe30] sm:$0xff]  ;;  %v811_v46 = vld [vmem:[#allocation7 + $0xfc0] sm:$0xff]  ;;  %v812_v47 = vld [vmem:[#allocation7 + $0xfc8] sm:$0xff] }
 0x152   : > { %3078 = vmatpush3.bf16.msra.mxu1 %v3077_v53  ;;  %v737_v53 = vld [vmem:[#allocation7 + $0xd70] sm:$0xff]  ;;  %v763_v51 = vld [vmem:[#allocation7 + $0xe40] sm:$0xff]  ;;  %v764_v52 = vld [vmem:[#allocation7 + $0xe48] sm:$0xff] }
 0x153   : > { %3080 = vmatprep.subr.bf16.mxu1 %v3079_v58  ;;  %v803_v58 = vld [vmem:[#allocation7 + $0xf80] sm:$0xff]  ;;  %v3101_v61 = vpack.c.bf16 %v738_v55, %v737_v53  ;;  %v796_v55 = vld [vmem:[#allocation7 + $0xf48] sm:$0xff] }
 0x154   : > { %3050 = vmatpush3.bf16.msra.mxu0 %v3049_v0  ;;  %v756_v0 = vld [vmem:[#allocation7 + $0xe08] sm:$0xff]  ;;  %v795_v53 = vld [vmem:[#allocation7 + $0xf40] sm:$0xff] }
 0x155   : > { %3052 = vmatprep.subr.bf16.mxu0 %v3051_v2  ;;  %v3135_v2 = vpack.c.bf16 %v804_v59, %v803_v58  ;;  %v3105_v9 = vpack.c.bf16 %v756_v0, %v755_v63  ;;  %v813_v58 = vld [vmem:[#allocation7 + $0xfd0] sm:$0xff]  ;;  %v814_v59 = vld [vmem:[#allocation7 + $0xfd8] sm:$0xff] }
 0x156   : > { %3082 = vmatpush3.bf16.msra.mxu1 %v3081_v1  ;;  %v787_v1 = vld [vmem:[#allocation7 + $0xf00] sm:$0xff]  ;;  %v765_v63 = vld [vmem:[#allocation7 + $0xe50] sm:$0xff]  ;;  %v766_v0 = vld [vmem:[#allocation7 + $0xe58] sm:$0xff] }
 0x157   : > { %3084 = vmatprep.subr.bf16.mxu1 %v3083_v6  ;;  %v805_v6 = vld [vmem:[#allocation7 + $0xf90] sm:$0xff]  ;;  %v3137_v11 = vpack.c.bf16 %v788_v3, %v787_v1  ;;  %v798_v3 = vld [vmem:[#allocation7 + $0xf58] sm:$0xff] }
 0x158   : > { %3054 = vmatpush3.bf16.msra.mxu0 %v3053_v12  ;;  %v3107_v12 = vpack.c.bf16 %v774_v5, %v773_v4  ;;  %v3139_v16 = vpack.c.bf16 %v806_v7, %v805_v6  ;;  %v797_v1 = vld [vmem:[#allocation7 + $0xf50] sm:$0xff]  ;;  %v783_v4 = vld [vmem:[#allocation7 + $0xee0] sm:$0xff]  ;;  %v784_v5 = vld [vmem:[#allocation7 + $0xee8] sm:$0xff]  ;;  %v821_v7 = vstv %s3713_s27 }
 0x159   : > { %3056 = vmatprep.subr.bf16.mxu0 %v3055_v14  ;;  %v758_v14 = vld [vmem:[#allocation7 + $0xe18] sm:$0xff]  ;;  %v819_v6 = vld [vmem:[%s3677_s30] sm:$0xff] }
 0x15a   : > { %3086 = vmatpush3.bf16.msra.mxu1 %v3085_v13  ;;  %v757_v13 = vld [vmem:[#allocation7 + $0xe10] sm:$0xff] }
 0x15b   : > { %3088 = vmatprep.subr.bf16.mxu1 %v3087_v18  ;;  %v775_v18 = vld [vmem:[#allocation7 + $0xea0] sm:$0xff]  ;;  %v3109_v23 = vpack.c.bf16 %v758_v14, %v757_v13  ;;  %v768_v14 = vld [vmem:[#allocation7 + $0xe68] sm:$0xff] }
 0x15c   : > { %3058 = vmatpush3.bf16.msra.mxu0 %v3057_v24  ;;  %v306_v24 = vld [vmem:[%s3664_s1 + $0xf8] sm:$0xff]  ;;  %v767_v13 = vld [vmem:[#allocation7 + $0xe60] sm:$0xff] }
 0x15d   : > { %3060 = vmatprep.subr.bf16.mxu0 %v3059_v26  ;;  %v3111_v26 = vpack.c.bf16 %v776_v19, %v775_v18  ;;  %v800_v19 = vld [vmem:[#allocation7 + $0xf68] sm:$0xff] }
 0x15e   : > { %3090 = vmatpush3.bf16.msra.mxu1 %v3089_v25  ;;  %v3141_v25 = vpack.c.bf16 %v790_v17, %v789_v15  ;;  %v799_v15 = vld [vmem:[#allocation7 + $0xf60] sm:$0xff]  ;;  %v822_v17 = vmul.f32 %v821_v7, %v819_v6 }
 0x15f   : > { %3092 = vmatprep.subr.bf16.mxu1 %v3091_v30  ;;  %v3143_v30 = vpack.c.bf16 %v808_v21, %v807_v20  ;;  %v785_v20 = vld [vmem:[#allocation7 + $0xef0] sm:$0xff]  ;;  %v786_v21 = vld [vmem:[#allocation7 + $0xef8] sm:$0xff] }
 0x160   : > { %3062 = vmatpush3.bf16.msra.mxu0 %v3061_v36  ;;  %v3113_v36 = vpack.c.bf16 %v760_v28, %v759_v27  ;;  %v3129_v28 = vpack.c.bf16 %v768_v14, %v767_v13 }
 0x161   : > { %3064 = vmatprep.subr.bf16.mxu0 %v3063_v38  ;;  %v3115_v38 = vpack.c.bf16 %v778_v33, %v777_v32  ;;  %v769_v32 = vld [vmem:[#allocation7 + $0xe70] sm:$0xff]  ;;  %v770_v33 = vld [vmem:[#allocation7 + $0xe78] sm:$0xff] }
 0x162   : > { %3094 = vmatpush3.bf16.msra.mxu1 %v3093_v37  ;;  %v3145_v37 = vpack.c.bf16 %v792_v31, %v791_v29  ;;  %v3131_v31 = vpack.c.bf16 %v786_v21, %v785_v20 }
 0x163   : > { %3096 = vmatprep.subr.bf16.mxu1 %v3095_v42  ;;  %v3147_v42 = vpack.c.bf16 %v810_v35, %v809_v34 }
 0x164   : > { %3066 = vmatpush3.bf16.msra.mxu0 %v3065_v48  ;;  %v3117_v48 = vpack.c.bf16 %v762_v40, %v761_v39  ;;  %v3133_v39 = vpack.c.bf16 %v770_v33, %v769_v32 }
 0x165   : > { %3068 = vmatprep.subr.bf16.mxu0 %v3067_v50  ;;  %v3119_v50 = vpack.c.bf16 %v780_v45, %v779_v44 }
 0x166   : > { %3098 = vmatpush3.bf16.msra.mxu1 %v3097_v49  ;;  %v3149_v49 = vpack.c.bf16 %v794_v43, %v793_v41  ;;  %v303_v41 = vld [vmem:[%s3664_s1 + $0xe0] sm:$0xff] }
 0x167   : > { %3100 = vmatprep.subr.bf16.mxu1 %v3099_v54  ;;  %v3151_v54 = vpack.c.bf16 %v812_v47, %v811_v46 }
 0x168   : > { %3070 = vmatpush3.bf16.msra.mxu0 %v3069_v60  ;;  %v3121_v60 = vpack.c.bf16 %v764_v52, %v763_v51 }
 0x169   : > { %3104 = vmatprep.subr.bf16.mxu0 %v3103_v62  ;;  %v3123_v62 = vpack.c.bf16 %v782_v57, %v781_v56 }
 0x16a   : > { %3102 = vmatpush3.bf16.msra.mxu1 %v3101_v61  ;;  %v3153_v61 = vpack.c.bf16 %v796_v55, %v795_v53 }
 0x16b   : > { %3136 = vmatprep.subr.bf16.mxu1 %v3135_v2  ;;  %1728 = vmatmul.mubr.f32.vlgmr.msra.gmra.mrb[12].mxu0 %v299_v8  ;;  %v3155_v2 = vpack.c.bf16 %v814_v59, %v813_v58  ;;  %v815_v8 = vld [vmem:[#allocation7 + $0xfe0] sm:$0xff] }
 0x16c   : > { %3106 = vmatpush3.bf16.msra.mxu0 %v3105_v9  ;;  %1867 = vmatprep.mubr.f32.mxu0 %v304_v22  ;;  %v816_v9 = vld [vmem:[#allocation7 + $0xfe8] sm:$0xff] }
 0x16d   : > { %1798 = vmatmul.mubr.f32.vlgmr.msra.gmra.mrb[12].mxu1 %v301_v10  ;;  %3108 = vmatprep.subr.bf16.mxu0 %v3107_v12  ;;  %v3125_v10 = vpack.c.bf16 %v766_v0, %v765_v63  ;;  %v3127_v12 = vpack.c.bf16 %v784_v5, %v783_v4  ;;  %v3159_v18 = vpack.c.bf16 %v816_v9, %v815_v8 }
 0x16e   : > { %3138 = vmatpush3.bf16.msra.mxu1 %v3137_v11  ;;  %1937 = vmatprep.mubr.f32.mxu1 %v306_v24  ;;  %v3157_v11 = vpack.c.bf16 %v798_v3, %v797_v1  ;;  %v817_v24 = vld [vmem:[#allocation7 + $0xff0] sm:$0xff] }
 0x16f   : > { %3140 = vmatprep.subr.bf16.mxu1 %v3139_v16 }
 0x170   : > { %3110 = vmatpush3.bf16.msra.mxu0 %v3109_v23 }
 0x171   : > { %3112 = vmatprep.subr.bf16.mxu0 %v3111_v26 }
 0x172   : > { %3142 = vmatpush3.bf16.msra.mxu1 %v3141_v25  ;;  %v818_v25 = vld [vmem:[#allocation7 + $0xff8] sm:$0xff] }
 0x173   : > { %3144 = vmatprep.subr.bf16.mxu1 %v3143_v30  ;;  %v3161_v30 = vpack.c.bf16 %v800_v19, %v799_v15  ;;  %v3163_v35 = vpack.c.bf16 %v818_v25, %v817_v24 }
 0x174   : > { %3114 = vmatpush3.bf16.msra.mxu0 %v3113_v36  ;;  %v801_v36 = vld [vmem:[#allocation7 + $0xf70] sm:$0xff] }
 0x175   : > { %3116 = vmatprep.subr.bf16.mxu0 %v3115_v38 }
 0x176   : > { %3146 = vmatpush3.bf16.msra.mxu1 %v3145_v37  ;;  %v802_v37 = vld [vmem:[#allocation7 + $0xf78] sm:$0xff] }
 0x177   : > { %3148 = vmatprep.subr.bf16.mxu1 %v3147_v42  ;;  %v3165_v40 = vpack.c.bf16 %v802_v37, %v801_v36  ;;  %v305_v42 = vld [vmem:[%s3664_s1 + $0xf0] sm:$0xff] }
 0x178   : > { %3118 = vmatpush3.bf16.msra.mxu0 %v3117_v48 }
 0x179   : > { %3120 = vmatprep.subr.bf16.mxu0 %v3119_v50 }
 0x17a   : > { %3150 = vmatpush3.bf16.msra.mxu1 %v3149_v49 }
 0x17b   : > { %3152 = vmatprep.subr.bf16.mxu1 %v3151_v54 }
 0x17c   : > { %3122 = vmatpush3.bf16.msra.mxu0 %v3121_v60 }
 0x17d   : > { %3124 = vmatprep.subr.bf16.mxu0 %v3123_v62 }
 0x17e   : > { %3154 = vmatpush3.bf16.msra.mxu1 %v3153_v61  ;;  %v2127_v16 = vpop.f32.mrb[0].mxu0 }
 0x17f   : > { %3156 = vmatprep.subr.bf16.mxu1 %v3155_v2  ;;  %v2128_v22 = vpop.f32.mrb[1].mxu0 }
 0x180   : > { %v2162_v23 = vpop.f32.mrb[0].mxu1  ;;  %v2129_v26 = vadd.f32 %v2128_v22, %v2127_v16  ;;  %3126 = vmatpush3.bf16.msra.mxu0 %v3125_v10 }
 0x181   : > { %v2163_v27 = vpop.f32.mrb[1].mxu1  ;;  %3128 = vmatprep.subr.bf16.mxu0 %v3127_v12 }
 0x182   : > { %v2164_v29 = vadd.f32 %v2163_v27, %v2162_v23  ;;  %3158 = vmatpush3.bf16.msra.mxu1 %v3157_v11  ;;  %v890_v34 = vadd.f32 %v2129_v26, %v822_v17 }
 0x183   : > { %3160 = vmatprep.subr.bf16.mxu1 %v3159_v18 }
 0x184   : > { %v960_v38 = vadd.f32 %v2164_v29, %v890_v34  ;;  %3130 = vmatpush3.bf16.msra.mxu0 %v3129_v28  ;;  %v1944_v34 = vstv %s1943_s14 }
 0x185   : > { %3132 = vmatprep.subr.bf16.mxu0 %v3131_v31 }
 0x186   : > { %3162 = vmatpush3.bf16.msra.mxu1 %v3161_v30 }
 0x187   : > { %3164 = vmatprep.subr.bf16.mxu1 %v3163_v35 }
 0x188   : > { %3134 = vmatpush3.bf16.msra.mxu0 %v3133_v39 }
 0x18a   : > { %3166 = vmatpush3.bf16.msra.mxu1 %v3165_v40 }
 0x18b   : > { %1868 = vmatmul.mubr.f32.vlgmr.msra.gmra.mrb[14].mxu0 %v303_v41 }
 0x18d   : > { %1938 = vmatmul.mubr.f32.vlgmr.msra.gmra.mrb[14].mxu1 %v305_v42 }
 0x19e   : > { %v2197_v43 = vpop.f32.mrb[2].mxu0 }
 0x19f   : > { %v2198_v44 = vpop.f32.mrb[3].mxu0 }
 0x1a0   : > { %v2232_v45 = vpop.f32.mrb[2].mxu1  ;;  %v2199_v46 = vadd.f32 %v2198_v44, %v2197_v43 }
 0x1a1   : > { %v2233_v47 = vpop.f32.mrb[3].mxu1 }
 0x1a2   : > { %v2234_v48 = vadd.f32 %v2233_v47, %v2232_v45  ;;  %v1030_v49 = vadd.f32 %v2199_v46, %v960_v38 }
 0x1a4   : > { %v1100_v50 = vadd.f32 %v2234_v48, %v1030_v49 }
 0x1be   : > { %v2267_v51 = vpop.f32.mrb[4].mxu0 }
 0x1bf   : > { %v2268_v52 = vpop.f32.mrb[5].mxu0 }
 0x1c0   : > { %v2302_v53 = vpop.f32.mrb[4].mxu1  ;;  %v2269_v54 = vadd.f32 %v2268_v52, %v2267_v51 }
 0x1c1   : > { %v2303_v55 = vpop.f32.mrb[5].mxu1 }
 0x1c2   : > { %v2304_v56 = vadd.f32 %v2303_v55, %v2302_v53  ;;  %v1170_v57 = vadd.f32 %v2269_v54, %v1100_v50 }
 0x1c4   : > { %v1240_v58 = vadd.f32 %v2304_v56, %v1170_v57 }
 0x1de   : > { %v2337_v59 = vpop.f32.mrb[6].mxu0 }
 0x1df   : > { %v2338_v60 = vpop.f32.mrb[7].mxu0 }
 0x1e0   : > { %v2372_v61 = vpop.f32.mrb[6].mxu1  ;;  %v2339_v62 = vadd.f32 %v2338_v60, %v2337_v59 }
 0x1e1   : > { %v2373_v63 = vpop.f32.mrb[7].mxu1 }
 0x1e2   : > { %v2374_v0 = vadd.f32 %v2373_v63, %v2372_v61  ;;  %v1310_v1 = vadd.f32 %v2339_v62, %v1240_v58 }
 0x1e4   : > { %v1380_v2 = vadd.f32 %v2374_v0, %v1310_v1 }
 0x1fe   : > { %v2407_v3 = vpop.f32.mrb[8].mxu0 }
 0x1ff   : > { %v2408_v4 = vpop.f32.mrb[9].mxu0 }
 0x200   : > { %v2442_v5 = vpop.f32.mrb[8].mxu1  ;;  %v2409_v6 = vadd.f32 %v2408_v4, %v2407_v3 }
 0x201   : > { %v2443_v7 = vpop.f32.mrb[9].mxu1 }
 0x202   : > { %v2444_v8 = vadd.f32 %v2443_v7, %v2442_v5  ;;  %v1450_v9 = vadd.f32 %v2409_v6, %v1380_v2 }
 0x204   : > { %v1520_v10 = vadd.f32 %v2444_v8, %v1450_v9 }
 0x21e   : > { %v2477_v11 = vpop.f32.mrb[10].mxu0 }
 0x21f   : > { %v2478_v12 = vpop.f32.mrb[11].mxu0 }
 0x220   : > { %v2512_v13 = vpop.f32.mrb[10].mxu1  ;;  %v2479_v14 = vadd.f32 %v2478_v12, %v2477_v11 }
 0x221   : > { %v2513_v15 = vpop.f32.mrb[11].mxu1 }
 0x222   : > { %v2514_v16 = vadd.f32 %v2513_v15, %v2512_v13  ;;  %v1590_v17 = vadd.f32 %v2479_v14, %v1520_v10 }
 0x224   : > { %v1660_v18 = vadd.f32 %v2514_v16, %v1590_v17 }
 0x23e   : > { %v2547_v19 = vpop.f32.mrb[12].mxu0 }
 0x23f   : > { %v2548_v20 = vpop.f32.mrb[13].mxu0 }
 0x240   : > { %v2582_v21 = vpop.f32.mrb[12].mxu1  ;;  %v2549_v22 = vadd.f32 %v2548_v20, %v2547_v19 }
 0x241   : > { %v2583_v23 = vpop.f32.mrb[13].mxu1 }
 0x242   : > { %v2584_v24 = vadd.f32 %v2583_v23, %v2582_v21  ;;  %v1730_v25 = vadd.f32 %v2549_v22, %v1660_v18 }
 0x244   : > { %v1800_v26 = vadd.f32 %v2584_v24, %v1730_v25 }
 0x25e   : > { %v2617_v27 = vpop.f32.mrb[14].mxu0 }
 0x25f   : > { %v2618_v28 = vpop.f32.mrb[15].mxu0 }
 0x260   : > { %v2652_v29 = vpop.f32.mrb[14].mxu1  ;;  %v2619_v30 = vadd.f32 %v2618_v28, %v2617_v27 }
 0x261   : > { %v2653_v31 = vpop.f32.mrb[15].mxu1 }
 0x262   : > { %v2654_v32 = vadd.f32 %v2653_v31, %v2652_v29  ;;  %v1870_v33 = vadd.f32 %v2619_v30, %v1800_v26 }
 0x264   : > { %v1940_v35 = vadd.f32 %v2654_v32, %v1870_v33 }
 0x266   : > { %v1945_v36 = vadd.f32 %v1944_v34, %v1940_v35 }
 0x268   : > { %1946 = vst [vmem:[%s274_s23] sm:$0xff] %v1945_v36 }
 0x269   : > { %3355 = shalt.err (!%p3352_p1)
}
 0x26a   : > { %s3356_s7 = scalar_lea.hbm %s3725_s11, 128  ;;  %s3360_s20 = scalar_lea.hbm %s3773_s4, 256 }
 0x26b   : > { %p3357_p4 = scmp.ne.s32.totalorder %s3725_s11, %s3356_s7  ;;  %p3361_p6 = scmp.lt.u32.totalorder %s3725_s11, %s3773_s4 }
 0x26c   : > { %p3362_p12 = scmp.lt.u32.totalorder %s3360_s20, %s3356_s7  ;;  %p3364_p3 = scmp.lt.u32.totalorder %s3356_s7, %s3725_s11 }
 0x26d   : > { %p3358_p5 = pnand %p3357_p4, %p3794_p0 }
 0x26e   : > { %p3363_p13 = por %p3362_p12, %p3361_p6 }
 0x26f   : > { %p3359_p11 = pneg %p3358_p5 }
 0x270   : > { %p3365_p2 = por %p3364_p3, %p3363_p13 }
 0x272   : > { %p3366_p8 = pnand %p3365_p2, %p3359_p11 }
 0x274   : > { %3369 = shalt.err (!%p3366_p8)
}
 0x275   : > { %3179 = dma.vmem_to_hbm [thread:$0]  (%p3794_p0), %s3727_s24, 128, %s3725_s11, %s1948_s9  }
 0x276 PF: > { %s1973_s30 = sand.u32 1, %s3408_s15   ;;  %p3795_p10 = scmp.ne.s32.totalorder %s3784_s29, 0 }
 0x277   : > { %p3796_p7 = scmp.ge.s32.totalorder %s3420_s18, 2  ;;  %s1974_s27 = scalar_lea.sflag [#allocation4], %s1973_s30 }
 0x279   : > { %p3196_p9 = pnand %p3796_p7, %p3795_p10 }
 0x27b   : > { %3403 = dma.done.wait (!%p3196_p9), %s1974_s27, 128  }
 0x27c   : > { %3405 = vsyncadd (!%p3196_p9), %s1974_s27, 4294967168  ;;  %s3797_s14 = sld [smem:[#allocation16_spill]]  ;;  %p19_p1 = scmp.ge.s32.totalorder %s3475_s19, 4  }
 0x27d   : > { %s3798_s15 = smov %s3412_s16  ;;  %s3799_s16 = smov %s3416_s17 }
 0x27e   : > { %s3801_s18 = smov %s3475_s19  ;;  %21 = sbr.rel (!%p19_p1) target bundleno = 9 (0x9), region = 101 }
 0x282   : > { %s3800_s17 = smov %s3797_s14 }
 0x285   :  { %1979 = vsyncpa [#allocation3], 1 }
 0x286   :  { %1981 = vsyncpa [#allocation3 + $0x1], 1 }
 0x287   :  { %1982 = vsyncpa [#allocation8], 1 }
 0x288   :  { %1983 = vsyncpa [#allocation4], 1 }
 0x289   :  { %1985 = vsyncpa [#allocation4 + $0x1], 1 }
 0x28a   :  { %1986 = vsyncpa [#allocation5], 1 }
 0x28b   :  { %1988 = vsyncpa [#allocation5 + $0x1], 1 }

</bundles_post_ra>
